<compile_context>
chip_gen: v7x
topology: tpu7x:2x2x1
jax: 0.10.0
libtpu: 0.0.40
codegen_flags: <defaults>
</compile_context>

<pallas_src>
import functools

import jax
import jax.numpy as jnp
from jax.experimental import pallas as pl
from jax.experimental.pallas import tpu as pltpu

# ---------------- config (small, consistent with the module) ----------------
HIDDEN = 128
NUM_HEADS = 8
HEAD_DIM = HIDDEN // NUM_HEADS          # 16
HALF = HEAD_DIM // 2                    # 8
NUM_KV_HEADS = 4
KV_DIM = NUM_KV_HEADS * HEAD_DIM        # 64
GROUPS = NUM_HEADS // NUM_KV_HEADS      # 2
INTER = 256
QKV_OUT = HIDDEN + 2 * KV_DIM           # 256
EPS = 1e-6
ROPE_THETA = 10000.0
VOCAB = 256
N_LAYERS = 2
BATCH = 2
SEQ = 8                                 # demo config has SEQ == NUM_HEADS


# ----------------------------- shared helpers --------------------------------
def _rmsnorm(x, w):
    var = jnp.mean(x * x, axis=-1, keepdims=True)
    return w * (x * jax.lax.rsqrt(var + EPS))


def _rotate_half_lanes(t):
    """rotate_half applied independently inside each 16-lane head block.

    Two full-width lane rotations (explicit slice+concat, the lowering of
    jnp.roll) + one select on an iota lane mask.  Cyclic wrap never leaks
    across head blocks because the mask only keeps in-block source lanes.
    """
    n = t.shape[-1]
    left = jnp.concatenate([t[:, HALF:], t[:, :HALF]], axis=1)            # t[l+8]
    right = jnp.concatenate([t[:, n - HALF:], t[:, :n - HALF]], axis=1)   # t[l-8]
    lane = jax.lax.broadcasted_iota(jnp.int32, t.shape, 1)
    return jnp.where((lane % HEAD_DIM) < HALF, -left, right)


def _rope_table(seq_len):
    inv_freq = 1.0 / (ROPE_THETA ** (jnp.arange(0.0, HEAD_DIM, 2.0) / HEAD_DIM))
    t = jnp.arange(seq_len, dtype=jnp.float32)
    si = jnp.einsum('i,j->ij', t, inv_freq)
    return jnp.concatenate([jnp.sin(si), jnp.cos(si)], axis=-1)   # (S, HEAD_DIM)


# ----------------------------- fused layer kernel ----------------------------
def _decoder_layer_kernel(x_ref, emb_q_ref, emb_k_ref, segsum_ref, omask_ref,
                          w_in_ln_ref, w_qkv_ref, b_qkv_ref, w_o_fold_ref,
                          w_post_ln_ref, w_gu_ref, w_down_ref, w_final_ln_ref,
                          o_ref, *, apply_final_norm):
    x = x_ref[...]                                  # (B*S, HIDDEN) f32
    n_batch = x.shape[0] // SEQ

    # ---- input RMSNorm ----
    h = _rmsnorm(x, w_in_ln_ref[...])

    # ---- packed QKV projection (bf16 operands, f32 accumulate) ----
    qkv = jnp.dot(h.astype(jnp.bfloat16), w_qkv_ref[...],
                  preferred_element_type=jnp.float32) + b_qkv_ref[...]
    q = qkv[:, :HIDDEN]                             # (R, 128)
    k = qkv[:, HIDDEN:HIDDEN + KV_DIM]              # (R, 64)
    v = qkv[:, HIDDEN + KV_DIM:]                    # (R, 64)

    # ---- RoPE of this module (cos == sin == emb), VPU elementwise ----
    q = (q + _rotate_half_lanes(q)) * emb_q_ref[...]
    k = (k + _rotate_half_lanes(k)) * emb_k_ref[...]

    # ---- per-position attention over heads, softmax over the 4 KV groups ----
    # (mathematically identical to the reference softmax over the 8
    #  repeat_interleave'd heads, whose scores come in equal pairs).
    scores = []
    vv = []
    for g in range(NUM_KV_HEADS):
        k_g = k[:, g * HEAD_DIM:(g + 1) * HEAD_DIM]
        v_g = v[:, g * HEAD_DIM:(g + 1) * HEAD_DIM]
        kk = jnp.concatenate([k_g] * NUM_HEADS, axis=1)            # (R, 128)
        vv.append(jnp.concatenate([v_g] * NUM_HEADS, axis=1))      # (R, 128)
        # per-head 16-lane segment sum (broadcast back over the segment) as a
        # single MXU matmul; scale 1/sqrt(HEAD_DIM) is folded into segsum.
        scores.append(jnp.dot(q * kk, segsum_ref[...],
                              preferred_element_type=jnp.float32))
    m = scores[0]
    for g in range(1, NUM_KV_HEADS):
        m = jnp.maximum(m, scores[g])
    e = [jnp.exp(s - m) for s in scores]
    denom = e[0]
    for g in range(1, NUM_KV_HEADS):
        denom = denom + e[g]
    inv = pl.reciprocal(denom, approx=True)         # ~1e-4 rel err, EUP slot
    ctx = (e[0] * inv) * vv[0]
    for g in range(1, NUM_KV_HEADS):
        ctx = ctx + (e[g] * inv) * vv[g]
    # ctx[b*S + s, h*16 + d] = attention output for (batch b, pos s, head h, d)

    # ---- o_proj fused with torch's transpose(1,2).view() layout swap ----
    # Output row h of batch b needs ctx[b, :, h-block, :]; that swap is folded
    # into w_o_fold on the host.  In-kernel: flatten each batch's (S,128)
    # context along lanes, replicate to its S output rows, mask each row to
    # its head's lane block, one lane-dense matmul.
    rep_rows = []
    for b in range(n_batch):
        rows = [ctx[b * SEQ + s:b * SEQ + s + 1, :] for s in range(SEQ)]
        flat = jnp.concatenate(rows, axis=1)                       # (1, S*128)
        rep_rows.extend([flat] * SEQ)
    ctx_rep = jnp.concatenate(rep_rows, axis=0) * omask_ref[...]   # (R, S*128)
    attn_o = jnp.dot(ctx_rep.astype(jnp.bfloat16), w_o_fold_ref[...],
                     preferred_element_type=jnp.float32)

    h1 = x + attn_o

    # ---- post-attention RMSNorm + packed gate/up MLP + residual ----
    hn = _rmsnorm(h1, w_post_ln_ref[...])
    gu = jnp.dot(hn.astype(jnp.bfloat16), w_gu_ref[...],
                 preferred_element_type=jnp.float32)
    gate = gu[:, :INTER]
    up = gu[:, INTER:]
    act = gate * jax.nn.sigmoid(gate) * up                         # SiLU(g)*u
    mlp = jnp.dot(act.astype(jnp.bfloat16), w_down_ref[...],
                  preferred_element_type=jnp.float32)
    out = h1 + mlp

    if apply_final_norm:               # fused Qwen2Model.norm on the last layer
        out = _rmsnorm(out, w_final_ln_ref[...])
    o_ref[...] = out


# ----------------------------- wrapper ----------------------------------------
def _attn_constants(batch, seq):
    # segsum: block-diagonal 16x16 ones scaled by 1/sqrt(D) -> per-head
    # segment-sum-and-broadcast via one MXU matmul.
    i = jnp.arange(HIDDEN)
    segsum = jnp.where((i[:, None] // HEAD_DIM) == (i[None, :] // HEAD_DIM),
                       1.0 / (HEAD_DIM ** 0.5), 0.0).astype(jnp.float32)
    # omask: output row r (head h = r % NUM_HEADS) keeps only its head's
    # 16-lane block inside every 128-lane position chunk.
    r = jnp.arange(batch * seq)[:, None]
    c = jnp.arange(seq * HIDDEN)[None, :]
    omask = (((c % HIDDEN) // HEAD_DIM) == (r % NUM_HEADS)).astype(jnp.float32)
    return segsum, omask


def _pack_layer(lp):
    wo_t = lp['wo'].T                                              # (128, 128)
    # o_proj weight with the transpose(1,2).view() head<->position swap folded
    # in: contraction index runs over (position s, lane c); each 16-row o_proj
    # block is replicated across the 8 head blocks (omask picks the right one).
    w_o_fold = jnp.concatenate(
        [jnp.tile(wo_t[s * HEAD_DIM:(s + 1) * HEAD_DIM, :], (NUM_HEADS, 1))
         for s in range(SEQ)], axis=0)                             # (S*128, 128)
    return {
        'w_in_ln': lp['w_in_ln'],
        'w_post_ln': lp['w_post_ln'],
        'w_qkv': jnp.concatenate([lp['wq'].T, lp['wk'].T, lp['wv'].T],
                                 axis=1).astype(jnp.bfloat16),     # (128, 256)
        'b_qkv': jnp.concatenate([lp['bq'], lp['bk'], lp['bv']]
                                 ).reshape(1, QKV_OUT),            # (1, 256)
        'w_o_fold': w_o_fold.astype(jnp.bfloat16),                 # (1024, 128)
        'w_gu': jnp.concatenate([lp['wg'].T, lp['wu'].T],
                                axis=1).astype(jnp.bfloat16),      # (128, 512)
        'w_down': lp['wd'].T.astype(jnp.bfloat16),                 # (256, 128)
    }


def _layer_call(x2d, emb_q, emb_k, segsum, omask, packed, w_final_ln,
                apply_final_norm):
    inputs = (x2d, emb_q, emb_k, segsum, omask,
              packed['w_in_ln'], packed['w_qkv'], packed['b_qkv'],
              packed['w_o_fold'], packed['w_post_ln'], packed['w_gu'],
              packed['w_down'], w_final_ln)

    def full_spec(a):
        nd = a.ndim
        return pl.BlockSpec(a.shape, lambda i, _nd=nd: (0,) * _nd)

    kernel = functools.partial(_decoder_layer_kernel,
                               apply_final_norm=apply_final_norm)
    # Single grid step: batch folded into the (B*S, HIDDEN) slab.
    # TODO(synk): on v7x, benchmark grid=(B,) with dimension_semantics
    # ("parallel",) (two TensorCores) against this single-step version.
    return pl.pallas_call(
        kernel,
        out_shape=jax.ShapeDtypeStruct(x2d.shape, jnp.float32),
        grid=(1,),
        in_specs=[full_spec(a) for a in inputs],
        out_specs=full_spec(x2d),
        compiler_params=pltpu.CompilerParams(
            dimension_semantics=("arbitrary",)),
    )(*inputs)


def qwen2_model_forward(input_ids, params, position_ids=None,
                        attention_mask=None):
    # TODO(synk): attention_mask addition not supported in the kernel (demo
    # uses None, matching the reference default path).
    assert attention_mask is None
    B, S = input_ids.shape
    # TODO(synk): the o_proj folding of torch's transpose(1,2).view() relies on
    # S == NUM_HEADS (true for this config), exactly like the reference layout.
    assert S == NUM_HEADS
    if position_ids is None:
        position_ids = jnp.arange(S, dtype=jnp.int32)

    # TODO(synk): embedding token gather kept in plain JAX (no Pallas gather
    # needed at this size).
    hidden = params['embed'][input_ids]                        # (B, S, HIDDEN)
    x2d = hidden.reshape(B * S, HIDDEN).astype(jnp.float32)

    # Rotary table (cos == sin == emb), pre-tiled across heads and batch so the
    # kernel applies it with pure elementwise math.
    emb = _rope_table(S)[position_ids]                         # (S, HEAD_DIM)
    emb_q = jnp.tile(emb, (B, NUM_HEADS)).astype(jnp.float32)       # (B*S, 128)
    emb_k = jnp.tile(emb, (B, NUM_KV_HEADS)).astype(jnp.float32)    # (B*S, 64)
    segsum, omask = _attn_constants(B, S)

    # TODO(synk): the per-layer weight set (~0.6 MiB bf16) is fully VMEM
    # resident; at real Qwen2 dims this breaks first on v7x (64 MiB VMEM) and
    # would need a K-dim reduction grid axis.  The layer loop could also be
    # folded into a grid axis over stacked weights for a single launch.
    n_layers = len(params['layers'])
    for li, lp in enumerate(params['layers']):
        x2d = _layer_call(x2d, emb_q, emb_k, segsum, omask, _pack_layer(lp),
                          params['w_final_ln'],
                          apply_final_norm=(li == n_layers - 1))
    return x2d.reshape(B, S, HIDDEN)


# ---------------------- deterministic parameter init -------------------------
def init_params(key, vocab=VOCAB, n_layers=N_LAYERS):
    keys = jax.random.split(key, n_layers + 1)
    embed = jax.random.normal(keys[0], (vocab, HIDDEN), jnp.float32)

    def w(k, shape):
        return 0.02 * jax.random.normal(k, shape, jnp.float32)

    layers = []
    for li in range(n_layers):
        ks = jax.random.split(keys[li + 1], 10)
        layers.append({
            'w_in_ln': jnp.ones((1, HIDDEN), jnp.float32),    # RMSNorm weight
            'w_post_ln': jnp.ones((1, HIDDEN), jnp.float32),
            'wq': w(ks[0], (HIDDEN, HIDDEN)), 'bq': w(ks[1], (HIDDEN,)),
            'wk': w(ks[2], (KV_DIM, HIDDEN)), 'bk': w(ks[3], (KV_DIM,)),
            'wv': w(ks[4], (KV_DIM, HIDDEN)), 'bv': w(ks[5], (KV_DIM,)),
            'wo': w(ks[6], (HIDDEN, HIDDEN)),
            'wg': w(ks[7], (INTER, HIDDEN)),
            'wu': w(ks[8], (INTER, HIDDEN)),
            'wd': w(ks[9], (HIDDEN, INTER)),
        })
    return {'embed': embed, 'layers': layers,
            'w_final_ln': jnp.ones((1, HIDDEN), jnp.float32)}


# ---------------------- pure-JAX reference (mirrors torch) -------------------
def _rotate_half_ref(x):
    half = x.shape[-1] // 2
    return jnp.concatenate([-x[..., half:], x[..., :half]], axis=-1)


def _reference_layer(x, lp, position_ids):
    B, S, _ = x.shape
    res = x
    h = _rmsnorm(x, lp['w_in_ln'])
    q = (h @ lp['wq'].T + lp['bq']).reshape(B, S, NUM_HEADS, HEAD_DIM)
    k = (h @ lp['wk'].T + lp['bk']).reshape(B, S, NUM_KV_HEADS, HEAD_DIM)
    v = (h @ lp['wv'].T + lp['bv']).reshape(B, S, NUM_KV_HEADS, HEAD_DIM)
    cs = _rope_table(S)[position_ids][:, None, :]       # (S, 1, D): unsqueeze(1)
    q = q * cs + _rotate_half_ref(q) * cs
    k = k * cs + _rotate_half_ref(k) * cs
    k = jnp.repeat(k, GROUPS, axis=2)
    v = jnp.repeat(v, GROUPS, axis=2)
    aw = jnp.einsum('bshd,bsjd->bshj', q, k) / (HEAD_DIM ** 0.5)
    aw = jax.nn.softmax(aw, axis=-1)
    ao = jnp.einsum('bshj,bsjd->bshd', aw, v)
    ao = jnp.transpose(ao, (0, 2, 1, 3)).reshape(B, S, HIDDEN)
    h1 = res + ao @ lp['wo'].T
    hn = _rmsnorm(h1, lp['w_post_ln'])
    g = hn @ lp['wg'].T
    g = g * jax.nn.sigmoid(g)
    return h1 + (g * (hn @ lp['wu'].T)) @ lp['wd'].T


def reference_model(input_ids, params, position_ids):
    h = params['embed'][input_ids]
    for lp in params['layers']:
        h = _reference_layer(h, lp, position_ids)
    return _rmsnorm(h, params['w_final_ln'])


if __name__ == "__main__":
    key = jax.random.PRNGKey(0)
    pkey, ikey = jax.random.split(key)
    params = init_params(pkey)
    input_ids = jax.random.randint(ikey, (BATCH, SEQ), 0, VOCAB,
                                   dtype=jnp.int32)

    out = qwen2_model_forward(input_ids, params)
    out = jax.block_until_ready(out)

    ref = reference_model(input_ids, params, jnp.arange(SEQ, dtype=jnp.int32))
    assert out.shape == (BATCH, SEQ, HIDDEN)
    max_err = float(jnp.max(jnp.abs(out - ref)))
    # bf16 matmul operands + approx softmax reciprocal -> expected ~1e-3 error
    # vs. the all-f32 reference; 2e-2 leaves ample margin.
    if max_err > 2e-2:
        raise AssertionError(f"kernel/reference mismatch, max abs err = {max_err}")

    print("KERNEL_OK")
</pallas_src>

<mosaic_0001>
module attributes {stable_mosaic.version = 11 : i64} {
  func.func @_decoder_layer_kernel(%arg0: i32, %arg1: memref<16x128xf32, #tpu.memory_space<vmem>>, %arg2: memref<16x128xf32, #tpu.memory_space<vmem>>, %arg3: memref<16x64xf32, #tpu.memory_space<vmem>>, %arg4: memref<128x128xf32, #tpu.memory_space<vmem>>, %arg5: memref<16x1024xf32, #tpu.memory_space<vmem>>, %arg6: memref<1x128xf32, #tpu.memory_space<vmem>>, %arg7: memref<128x256xbf16, #tpu.memory_space<vmem>>, %arg8: memref<1x256xf32, #tpu.memory_space<vmem>>, %arg9: memref<1024x128xbf16, #tpu.memory_space<vmem>>, %arg10: memref<1x128xf32, #tpu.memory_space<vmem>>, %arg11: memref<128x512xbf16, #tpu.memory_space<vmem>>, %arg12: memref<256x128xbf16, #tpu.memory_space<vmem>>, %arg13: memref<1x128xf32, #tpu.memory_space<vmem>>, %arg14: memref<16x128xf32, #tpu.memory_space<vmem>>) attributes {dimension_semantics = [#tpu.dimension_semantics<arbitrary>], iteration_bounds = array<i64: 1>, scalar_prefetch = 0 : i64, scratch_operands = 0 : i64, tpu.core_type = #tpu.core_type<tc>, window_params = [{pipeline_mode = #tpu.pipeline_mode<synchronous>, transform_indices = @transform_0, window_bounds = array<i64: 16, 128>}, {pipeline_mode = #tpu.pipeline_mode<synchronous>, transform_indices = @transform_1, window_bounds = array<i64: 16, 128>}, {pipeline_mode = #tpu.pipeline_mode<synchronous>, transform_indices = @transform_2, window_bounds = array<i64: 16, 64>}, {pipeline_mode = #tpu.pipeline_mode<synchronous>, transform_indices = @transform_3, window_bounds = array<i64: 128, 128>}, {pipeline_mode = #tpu.pipeline_mode<synchronous>, transform_indices = @transform_4, window_bounds = array<i64: 16, 1024>}, {pipeline_mode = #tpu.pipeline_mode<synchronous>, transform_indices = @transform_5, window_bounds = array<i64: 1, 128>}, {pipeline_mode = #tpu.pipeline_mode<synchronous>, transform_indices = @transform_6, window_bounds = array<i64: 128, 256>}, {pipeline_mode = #tpu.pipeline_mode<synchronous>, transform_indices = @transform_7, window_bounds = array<i64: 1, 256>}, {pipeline_mode = #tpu.pipeline_mode<synchronous>, transform_indices = @transform_8, window_bounds = array<i64: 1024, 128>}, {pipeline_mode = #tpu.pipeline_mode<synchronous>, transform_indices = @transform_9, window_bounds = array<i64: 1, 128>}, {pipeline_mode = #tpu.pipeline_mode<synchronous>, transform_indices = @transform_10, window_bounds = array<i64: 128, 512>}, {pipeline_mode = #tpu.pipeline_mode<synchronous>, transform_indices = @transform_11, window_bounds = array<i64: 256, 128>}, {pipeline_mode = #tpu.pipeline_mode<synchronous>, transform_indices = @transform_12, window_bounds = array<i64: 1, 128>}, {pipeline_mode = #tpu.pipeline_mode<synchronous>, transform_indices = @transform_13, window_bounds = array<i64: 16, 128>}]} {
    %c0 = arith.constant 0 : index
    %c0_0 = arith.constant 0 : index
    %0 = vector.load %arg1[%c0, %c0_0] : memref<16x128xf32, #tpu.memory_space<vmem>>, vector<16x128xf32>
    %c0_1 = arith.constant 0 : index
    %c0_2 = arith.constant 0 : index
    %1 = vector.load %arg6[%c0_1, %c0_2] : memref<1x128xf32, #tpu.memory_space<vmem>>, vector<1x128xf32>
    %2 = arith.mulf %0, %0 : vector<16x128xf32>
    %cst = arith.constant dense<0.000000e+00> : vector<16xf32>
    %3 = vector.multi_reduction <add>, %2, %cst [1] : vector<16x128xf32> to vector<16xf32>
    %4 = vector.shape_cast %3 : vector<16xf32> to vector<16x1xf32>
    %cst_3 = arith.constant 1.280000e+02 : f32
    %5 = vector.broadcast %cst_3 : f32 to vector<16x1xf32>
    %6 = arith.divf %4, %5 : vector<16x1xf32>
    %cst_4 = arith.constant 9.99999997E-7 : f32
    %7 = vector.broadcast %cst_4 : f32 to vector<16x1xf32>
    %8 = arith.addf %6, %7 : vector<16x1xf32>
    %9 = math.rsqrt %8 : vector<16x1xf32>
    %10 = vector.broadcast %9 : vector<16x1xf32> to vector<16x128xf32>
    %11 = arith.mulf %0, %10 : vector<16x128xf32>
    %12 = vector.broadcast %1 : vector<1x128xf32> to vector<16x128xf32>
    %13 = arith.mulf %12, %11 : vector<16x128xf32>
    %14 = arith.truncf %13 : vector<16x128xf32> to vector<16x128xbf16>
    %c0_5 = arith.constant 0 : index
    %c0_6 = arith.constant 0 : index
    %15 = vector.load %arg7[%c0_5, %c0_6] : memref<128x256xbf16, #tpu.memory_space<vmem>>, vector<128x256xbf16>
    %cst_7 = arith.constant dense<0.000000e+00> : vector<16x256xf32>
    %16 = tpu.matmul %14, %15, %cst_7 {dimension_numbers = #tpu.dot_dimension_numbers<[1], [0], [0], [1], [0, 0, 1, 1], [], []>} : vector<16x128xbf16>, vector<128x256xbf16>, vector<16x256xf32> -> vector<16x256xf32>
    %c0_8 = arith.constant 0 : index
    %c0_9 = arith.constant 0 : index
    %17 = vector.load %arg8[%c0_8, %c0_9] : memref<1x256xf32, #tpu.memory_space<vmem>>, vector<1x256xf32>
    %18 = vector.broadcast %17 : vector<1x256xf32> to vector<16x256xf32>
    %19 = arith.addf %16, %18 : vector<16x256xf32>
    %20 = vector.extract_strided_slice %19 {offsets = [0, 0], sizes = [16, 128], strides = [1, 1]} : vector<16x256xf32> to vector<16x128xf32>
    %21 = vector.extract_strided_slice %19 {offsets = [0, 128], sizes = [16, 64], strides = [1, 1]} : vector<16x256xf32> to vector<16x64xf32>
    %22 = vector.extract_strided_slice %19 {offsets = [0, 192], sizes = [16, 64], strides = [1, 1]} : vector<16x256xf32> to vector<16x64xf32>
    %23 = vector.extract_strided_slice %20 {offsets = [0, 8], sizes = [16, 120], strides = [1, 1]} : vector<16x128xf32> to vector<16x120xf32>
    %24 = vector.extract_strided_slice %20 {offsets = [0, 0], sizes = [16, 8], strides = [1, 1]} : vector<16x128xf32> to vector<16x8xf32>
    %25 = tpu.concatenate %23, %24 in 1 : vector<16x120xf32>, vector<16x8xf32> -> vector<16x128xf32>
    %26 = vector.extract_strided_slice %20 {offsets = [0, 120], sizes = [16, 8], strides = [1, 1]} : vector<16x128xf32> to vector<16x8xf32>
    %27 = vector.extract_strided_slice %20 {offsets = [0, 0], sizes = [16, 120], strides = [1, 1]} : vector<16x128xf32> to vector<16x120xf32>
    %28 = tpu.concatenate %26, %27 in 1 : vector<16x8xf32>, vector<16x120xf32> -> vector<16x128xf32>
    %29 = tpu.iota {dimensions = array<i32: 1>} : vector<16x128xi32>
    %c16_i32 = arith.constant 16 : i32
    %c0_i32 = arith.constant 0 : i32
    %30 = arith.cmpi eq, %c16_i32, %c0_i32 : i32
    %c1_i32 = arith.constant 1 : i32
    %31 = arith.select %30, %c1_i32, %c16_i32 : i32
    %32 = vector.broadcast %31 : i32 to vector<16x128xi32>
    %33 = arith.remsi %29, %32 : vector<16x128xi32>
    %c0_i32_10 = arith.constant 0 : i32
    %34 = vector.broadcast %c0_i32_10 : i32 to vector<16x128xi32>
    %35 = arith.cmpi ne, %33, %34 : vector<16x128xi32>
    %c0_i32_11 = arith.constant 0 : i32
    %36 = vector.broadcast %c0_i32_11 : i32 to vector<16x128xi32>
    %37 = arith.cmpi slt, %33, %36 : vector<16x128xi32>
    %c0_i32_12 = arith.constant 0 : i32
    %38 = arith.cmpi slt, %31, %c0_i32_12 : i32
    %39 = vector.broadcast %38 : i1 to vector<16x128xi1>
    %40 = vector.broadcast %39 : vector<16x128xi1> to vector<16x128xi1>
    %41 = arith.xori %37, %40 : vector<16x128xi1>
    %42 = arith.andi %41, %35 : vector<16x128xi1>
    %43 = vector.broadcast %31 : i32 to vector<16x128xi32>
    %44 = arith.addi %33, %43 : vector<16x128xi32>
    %45 = arith.select %42, %44, %33 : vector<16x128xi1>, vector<16x128xi32>
    %c8_i32 = arith.constant 8 : i32
    %46 = vector.broadcast %c8_i32 : i32 to vector<16x128xi32>
    %47 = arith.cmpi slt, %45, %46 : vector<16x128xi32>
    %cst_13 = arith.constant 0.000000e+00 : f32
    %48 = vector.broadcast %cst_13 : f32 to vector<16x128xf32>
    %49 = arith.subf %48, %25 : vector<16x128xf32>
    %50 = arith.select %47, %49, %28 : vector<16x128xi1>, vector<16x128xf32>
    %51 = arith.addf %20, %50 : vector<16x128xf32>
    %c0_14 = arith.constant 0 : index
    %c0_15 = arith.constant 0 : index
    %52 = vector.load %arg2[%c0_14, %c0_15] : memref<16x128xf32, #tpu.memory_space<vmem>>, vector<16x128xf32>
    %53 = arith.mulf %51, %52 : vector<16x128xf32>
    %54 = vector.extract_strided_slice %21 {offsets = [0, 8], sizes = [16, 56], strides = [1, 1]} : vector<16x64xf32> to vector<16x56xf32>
    %55 = vector.extract_strided_slice %21 {offsets = [0, 0], sizes = [16, 8], strides = [1, 1]} : vector<16x64xf32> to vector<16x8xf32>
    %56 = tpu.concatenate %54, %55 in 1 : vector<16x56xf32>, vector<16x8xf32> -> vector<16x64xf32>
    %57 = vector.extract_strided_slice %21 {offsets = [0, 56], sizes = [16, 8], strides = [1, 1]} : vector<16x64xf32> to vector<16x8xf32>
    %58 = vector.extract_strided_slice %21 {offsets = [0, 0], sizes = [16, 56], strides = [1, 1]} : vector<16x64xf32> to vector<16x56xf32>
    %59 = tpu.concatenate %57, %58 in 1 : vector<16x8xf32>, vector<16x56xf32> -> vector<16x64xf32>
    %60 = tpu.iota {dimensions = array<i32: 1>} : vector<16x64xi32>
    %c16_i32_16 = arith.constant 16 : i32
    %c0_i32_17 = arith.constant 0 : i32
    %61 = arith.cmpi eq, %c16_i32_16, %c0_i32_17 : i32
    %c1_i32_18 = arith.constant 1 : i32
    %62 = arith.select %61, %c1_i32_18, %c16_i32_16 : i32
    %63 = vector.broadcast %62 : i32 to vector<16x64xi32>
    %64 = arith.remsi %60, %63 : vector<16x64xi32>
    %c0_i32_19 = arith.constant 0 : i32
    %65 = vector.broadcast %c0_i32_19 : i32 to vector<16x64xi32>
    %66 = arith.cmpi ne, %64, %65 : vector<16x64xi32>
    %c0_i32_20 = arith.constant 0 : i32
    %67 = vector.broadcast %c0_i32_20 : i32 to vector<16x64xi32>
    %68 = arith.cmpi slt, %64, %67 : vector<16x64xi32>
    %c0_i32_21 = arith.constant 0 : i32
    %69 = arith.cmpi slt, %62, %c0_i32_21 : i32
    %70 = vector.broadcast %69 : i1 to vector<16x64xi1>
    %71 = vector.broadcast %70 : vector<16x64xi1> to vector<16x64xi1>
    %72 = arith.xori %68, %71 : vector<16x64xi1>
    %73 = arith.andi %72, %66 : vector<16x64xi1>
    %74 = vector.broadcast %62 : i32 to vector<16x64xi32>
    %75 = arith.addi %64, %74 : vector<16x64xi32>
    %76 = arith.select %73, %75, %64 : vector<16x64xi1>, vector<16x64xi32>
    %c8_i32_22 = arith.constant 8 : i32
    %77 = vector.broadcast %c8_i32_22 : i32 to vector<16x64xi32>
    %78 = arith.cmpi slt, %76, %77 : vector<16x64xi32>
    %cst_23 = arith.constant 0.000000e+00 : f32
    %79 = vector.broadcast %cst_23 : f32 to vector<16x64xf32>
    %80 = arith.subf %79, %56 : vector<16x64xf32>
    %81 = arith.select %78, %80, %59 : vector<16x64xi1>, vector<16x64xf32>
    %82 = arith.addf %21, %81 : vector<16x64xf32>
    %c0_24 = arith.constant 0 : index
    %c0_25 = arith.constant 0 : index
    %83 = vector.load %arg3[%c0_24, %c0_25] : memref<16x64xf32, #tpu.memory_space<vmem>>, vector<16x64xf32>
    %84 = arith.mulf %82, %83 : vector<16x64xf32>
    %85 = vector.extract_strided_slice %84 {offsets = [0, 0], sizes = [16, 16], strides = [1, 1]} : vector<16x64xf32> to vector<16x16xf32>
    %86 = vector.extract_strided_slice %22 {offsets = [0, 0], sizes = [16, 16], strides = [1, 1]} : vector<16x64xf32> to vector<16x16xf32>
    %87 = tpu.concatenate %85, %85, %85, %85, %85, %85, %85, %85 in 1 : vector<16x16xf32>, vector<16x16xf32>, vector<16x16xf32>, vector<16x16xf32>, vector<16x16xf32>, vector<16x16xf32>, vector<16x16xf32>, vector<16x16xf32> -> vector<16x128xf32>
    %88 = tpu.concatenate %86, %86, %86, %86, %86, %86, %86, %86 in 1 : vector<16x16xf32>, vector<16x16xf32>, vector<16x16xf32>, vector<16x16xf32>, vector<16x16xf32>, vector<16x16xf32>, vector<16x16xf32>, vector<16x16xf32> -> vector<16x128xf32>
    %89 = arith.mulf %53, %87 : vector<16x128xf32>
    %c0_26 = arith.constant 0 : index
    %c0_27 = arith.constant 0 : index
    %90 = vector.load %arg4[%c0_26, %c0_27] : memref<128x128xf32, #tpu.memory_space<vmem>>, vector<128x128xf32>
    %cst_28 = arith.constant dense<0.000000e+00> : vector<16x128xf32>
    %91 = tpu.matmul %89, %90, %cst_28 {dimension_numbers = #tpu.dot_dimension_numbers<[1], [0], [0], [1], [0, 0, 1, 1], [], []>} : vector<16x128xf32>, vector<128x128xf32>, vector<16x128xf32> -> vector<16x128xf32>
    %92 = vector.extract_strided_slice %84 {offsets = [0, 16], sizes = [16, 16], strides = [1, 1]} : vector<16x64xf32> to vector<16x16xf32>
    %93 = vector.extract_strided_slice %22 {offsets = [0, 16], sizes = [16, 16], strides = [1, 1]} : vector<16x64xf32> to vector<16x16xf32>
    %94 = tpu.concatenate %92, %92, %92, %92, %92, %92, %92, %92 in 1 : vector<16x16xf32>, vector<16x16xf32>, vector<16x16xf32>, vector<16x16xf32>, vector<16x16xf32>, vector<16x16xf32>, vector<16x16xf32>, vector<16x16xf32> -> vector<16x128xf32>
    %95 = tpu.concatenate %93, %93, %93, %93, %93, %93, %93, %93 in 1 : vector<16x16xf32>, vector<16x16xf32>, vector<16x16xf32>, vector<16x16xf32>, vector<16x16xf32>, vector<16x16xf32>, vector<16x16xf32>, vector<16x16xf32> -> vector<16x128xf32>
    %96 = arith.mulf %53, %94 : vector<16x128xf32>
    %c0_29 = arith.constant 0 : index
    %c0_30 = arith.constant 0 : index
    %97 = vector.load %arg4[%c0_29, %c0_30] : memref<128x128xf32, #tpu.memory_space<vmem>>, vector<128x128xf32>
    %cst_31 = arith.constant dense<0.000000e+00> : vector<16x128xf32>
    %98 = tpu.matmul %96, %97, %cst_31 {dimension_numbers = #tpu.dot_dimension_numbers<[1], [0], [0], [1], [0, 0, 1, 1], [], []>} : vector<16x128xf32>, vector<128x128xf32>, vector<16x128xf32> -> vector<16x128xf32>
    %99 = vector.extract_strided_slice %84 {offsets = [0, 32], sizes = [16, 16], strides = [1, 1]} : vector<16x64xf32> to vector<16x16xf32>
    %100 = vector.extract_strided_slice %22 {offsets = [0, 32], sizes = [16, 16], strides = [1, 1]} : vector<16x64xf32> to vector<16x16xf32>
    %101 = tpu.concatenate %99, %99, %99, %99, %99, %99, %99, %99 in 1 : vector<16x16xf32>, vector<16x16xf32>, vector<16x16xf32>, vector<16x16xf32>, vector<16x16xf32>, vector<16x16xf32>, vector<16x16xf32>, vector<16x16xf32> -> vector<16x128xf32>
    %102 = tpu.concatenate %100, %100, %100, %100, %100, %100, %100, %100 in 1 : vector<16x16xf32>, vector<16x16xf32>, vector<16x16xf32>, vector<16x16xf32>, vector<16x16xf32>, vector<16x16xf32>, vector<16x16xf32>, vector<16x16xf32> -> vector<16x128xf32>
    %103 = arith.mulf %53, %101 : vector<16x128xf32>
    %c0_32 = arith.constant 0 : index
    %c0_33 = arith.constant 0 : index
    %104 = vector.load %arg4[%c0_32, %c0_33] : memref<128x128xf32, #tpu.memory_space<vmem>>, vector<128x128xf32>
    %cst_34 = arith.constant dense<0.000000e+00> : vector<16x128xf32>
    %105 = tpu.matmul %103, %104, %cst_34 {dimension_numbers = #tpu.dot_dimension_numbers<[1], [0], [0], [1], [0, 0, 1, 1], [], []>} : vector<16x128xf32>, vector<128x128xf32>, vector<16x128xf32> -> vector<16x128xf32>
    %106 = vector.extract_strided_slice %84 {offsets = [0, 48], sizes = [16, 16], strides = [1, 1]} : vector<16x64xf32> to vector<16x16xf32>
    %107 = vector.extract_strided_slice %22 {offsets = [0, 48], sizes = [16, 16], strides = [1, 1]} : vector<16x64xf32> to vector<16x16xf32>
    %108 = tpu.concatenate %106, %106, %106, %106, %106, %106, %106, %106 in 1 : vector<16x16xf32>, vector<16x16xf32>, vector<16x16xf32>, vector<16x16xf32>, vector<16x16xf32>, vector<16x16xf32>, vector<16x16xf32>, vector<16x16xf32> -> vector<16x128xf32>
    %109 = tpu.concatenate %107, %107, %107, %107, %107, %107, %107, %107 in 1 : vector<16x16xf32>, vector<16x16xf32>, vector<16x16xf32>, vector<16x16xf32>, vector<16x16xf32>, vector<16x16xf32>, vector<16x16xf32>, vector<16x16xf32> -> vector<16x128xf32>
    %110 = arith.mulf %53, %108 : vector<16x128xf32>
    %c0_35 = arith.constant 0 : index
    %c0_36 = arith.constant 0 : index
    %111 = vector.load %arg4[%c0_35, %c0_36] : memref<128x128xf32, #tpu.memory_space<vmem>>, vector<128x128xf32>
    %cst_37 = arith.constant dense<0.000000e+00> : vector<16x128xf32>
    %112 = tpu.matmul %110, %111, %cst_37 {dimension_numbers = #tpu.dot_dimension_numbers<[1], [0], [0], [1], [0, 0, 1, 1], [], []>} : vector<16x128xf32>, vector<128x128xf32>, vector<16x128xf32> -> vector<16x128xf32>
    %113 = arith.maximumf %91, %98 : vector<16x128xf32>
    %114 = arith.maximumf %113, %105 : vector<16x128xf32>
    %115 = arith.maximumf %114, %112 : vector<16x128xf32>
    %116 = arith.subf %91, %115 : vector<16x128xf32>
    %117 = math.exp %116 : vector<16x128xf32>
    %118 = arith.subf %98, %115 : vector<16x128xf32>
    %119 = math.exp %118 : vector<16x128xf32>
    %120 = arith.subf %105, %115 : vector<16x128xf32>
    %121 = math.exp %120 : vector<16x128xf32>
    %122 = arith.subf %112, %115 : vector<16x128xf32>
    %123 = math.exp %122 : vector<16x128xf32>
    %124 = arith.addf %117, %119 : vector<16x128xf32>
    %125 = arith.addf %124, %121 : vector<16x128xf32>
    %126 = arith.addf %125, %123 : vector<16x128xf32>
    %127 = tpu.reciprocal %126 {approx = true} : vector<16x128xf32> -> vector<16x128xf32>
    %128 = arith.mulf %117, %127 : vector<16x128xf32>
    %129 = arith.mulf %128, %88 : vector<16x128xf32>
    %130 = arith.mulf %119, %127 : vector<16x128xf32>
    %131 = arith.mulf %130, %95 : vector<16x128xf32>
    %132 = arith.addf %129, %131 : vector<16x128xf32>
    %133 = arith.mulf %121, %127 : vector<16x128xf32>
    %134 = arith.mulf %133, %102 : vector<16x128xf32>
    %135 = arith.addf %132, %134 : vector<16x128xf32>
    %136 = arith.mulf %123, %127 : vector<16x128xf32>
    %137 = arith.mulf %136, %109 : vector<16x128xf32>
    %138 = arith.addf %135, %137 : vector<16x128xf32>
    %139 = vector.extract_strided_slice %138 {offsets = [0, 0], sizes = [1, 128], strides = [1, 1]} : vector<16x128xf32> to vector<1x128xf32>
    %140 = vector.extract_strided_slice %138 {offsets = [1, 0], sizes = [1, 128], strides = [1, 1]} : vector<16x128xf32> to vector<1x128xf32>
    %141 = vector.extract_strided_slice %138 {offsets = [2, 0], sizes = [1, 128], strides = [1, 1]} : vector<16x128xf32> to vector<1x128xf32>
    %142 = vector.extract_strided_slice %138 {offsets = [3, 0], sizes = [1, 128], strides = [1, 1]} : vector<16x128xf32> to vector<1x128xf32>
    %143 = vector.extract_strided_slice %138 {offsets = [4, 0], sizes = [1, 128], strides = [1, 1]} : vector<16x128xf32> to vector<1x128xf32>
    %144 = vector.extract_strided_slice %138 {offsets = [5, 0], sizes = [1, 128], strides = [1, 1]} : vector<16x128xf32> to vector<1x128xf32>
    %145 = vector.extract_strided_slice %138 {offsets = [6, 0], sizes = [1, 128], strides = [1, 1]} : vector<16x128xf32> to vector<1x128xf32>
    %146 = vector.extract_strided_slice %138 {offsets = [7, 0], sizes = [1, 128], strides = [1, 1]} : vector<16x128xf32> to vector<1x128xf32>
    %147 = tpu.concatenate %139, %140, %141, %142, %143, %144, %145, %146 in 1 : vector<1x128xf32>, vector<1x128xf32>, vector<1x128xf32>, vector<1x128xf32>, vector<1x128xf32>, vector<1x128xf32>, vector<1x128xf32>, vector<1x128xf32> -> vector<1x1024xf32>
    %148 = vector.extract_strided_slice %138 {offsets = [8, 0], sizes = [1, 128], strides = [1, 1]} : vector<16x128xf32> to vector<1x128xf32>
    %149 = vector.extract_strided_slice %138 {offsets = [9, 0], sizes = [1, 128], strides = [1, 1]} : vector<16x128xf32> to vector<1x128xf32>
    %150 = vector.extract_strided_slice %138 {offsets = [10, 0], sizes = [1, 128], strides = [1, 1]} : vector<16x128xf32> to vector<1x128xf32>
    %151 = vector.extract_strided_slice %138 {offsets = [11, 0], sizes = [1, 128], strides = [1, 1]} : vector<16x128xf32> to vector<1x128xf32>
    %152 = vector.extract_strided_slice %138 {offsets = [12, 0], sizes = [1, 128], strides = [1, 1]} : vector<16x128xf32> to vector<1x128xf32>
    %153 = vector.extract_strided_slice %138 {offsets = [13, 0], sizes = [1, 128], strides = [1, 1]} : vector<16x128xf32> to vector<1x128xf32>
    %154 = vector.extract_strided_slice %138 {offsets = [14, 0], sizes = [1, 128], strides = [1, 1]} : vector<16x128xf32> to vector<1x128xf32>
    %155 = vector.extract_strided_slice %138 {offsets = [15, 0], sizes = [1, 128], strides = [1, 1]} : vector<16x128xf32> to vector<1x128xf32>
    %156 = tpu.concatenate %148, %149, %150, %151, %152, %153, %154, %155 in 1 : vector<1x128xf32>, vector<1x128xf32>, vector<1x128xf32>, vector<1x128xf32>, vector<1x128xf32>, vector<1x128xf32>, vector<1x128xf32>, vector<1x128xf32> -> vector<1x1024xf32>
    %157 = tpu.concatenate %147, %147, %147, %147, %147, %147, %147, %147, %156, %156, %156, %156, %156, %156, %156, %156 in 0 : vector<1x1024xf32>, vector<1x1024xf32>, vector<1x1024xf32>, vector<1x1024xf32>, vector<1x1024xf32>, vector<1x1024xf32>, vector<1x1024xf32>, vector<1x1024xf32>, vector<1x1024xf32>, vector<1x1024xf32>, vector<1x1024xf32>, vector<1x1024xf32>, vector<1x1024xf32>, vector<1x1024xf32>, vector<1x1024xf32>, vector<1x1024xf32> -> vector<16x1024xf32>
    %c0_38 = arith.constant 0 : index
    %c0_39 = arith.constant 0 : index
    %158 = vector.load %arg5[%c0_38, %c0_39] : memref<16x1024xf32, #tpu.memory_space<vmem>>, vector<16x1024xf32>
    %159 = arith.mulf %157, %158 : vector<16x1024xf32>
    %160 = arith.truncf %159 : vector<16x1024xf32> to vector<16x1024xbf16>
    %c0_40 = arith.constant 0 : index
    %c0_41 = arith.constant 0 : index
    %161 = vector.load %arg9[%c0_40, %c0_41] : memref<1024x128xbf16, #tpu.memory_space<vmem>>, vector<1024x128xbf16>
    %cst_42 = arith.constant dense<0.000000e+00> : vector<16x128xf32>
    %162 = tpu.matmul %160, %161, %cst_42 {dimension_numbers = #tpu.dot_dimension_numbers<[1], [0], [0], [1], [0, 0, 1, 1], [], []>} : vector<16x1024xbf16>, vector<1024x128xbf16>, vector<16x128xf32> -> vector<16x128xf32>
    %163 = arith.addf %0, %162 : vector<16x128xf32>
    %c0_43 = arith.constant 0 : index
    %c0_44 = arith.constant 0 : index
    %164 = vector.load %arg10[%c0_43, %c0_44] : memref<1x128xf32, #tpu.memory_space<vmem>>, vector<1x128xf32>
    %165 = arith.mulf %163, %163 : vector<16x128xf32>
    %cst_45 = arith.constant dense<0.000000e+00> : vector<16xf32>
    %166 = vector.multi_reduction <add>, %165, %cst_45 [1] : vector<16x128xf32> to vector<16xf32>
    %167 = vector.shape_cast %166 : vector<16xf32> to vector<16x1xf32>
    %cst_46 = arith.constant 1.280000e+02 : f32
    %168 = vector.broadcast %cst_46 : f32 to vector<16x1xf32>
    %169 = arith.divf %167, %168 : vector<16x1xf32>
    %cst_47 = arith.constant 9.99999997E-7 : f32
    %170 = vector.broadcast %cst_47 : f32 to vector<16x1xf32>
    %171 = arith.addf %169, %170 : vector<16x1xf32>
    %172 = math.rsqrt %171 : vector<16x1xf32>
    %173 = vector.broadcast %172 : vector<16x1xf32> to vector<16x128xf32>
    %174 = arith.mulf %163, %173 : vector<16x128xf32>
    %175 = vector.broadcast %164 : vector<1x128xf32> to vector<16x128xf32>
    %176 = arith.mulf %175, %174 : vector<16x128xf32>
    %177 = arith.truncf %176 : vector<16x128xf32> to vector<16x128xbf16>
    %c0_48 = arith.constant 0 : index
    %c0_49 = arith.constant 0 : index
    %178 = vector.load %arg11[%c0_48, %c0_49] : memref<128x512xbf16, #tpu.memory_space<vmem>>, vector<128x512xbf16>
    %cst_50 = arith.constant dense<0.000000e+00> : vector<16x512xf32>
    %179 = tpu.matmul %177, %178, %cst_50 {dimension_numbers = #tpu.dot_dimension_numbers<[1], [0], [0], [1], [0, 0, 1, 1], [], []>} : vector<16x128xbf16>, vector<128x512xbf16>, vector<16x512xf32> -> vector<16x512xf32>
    %180 = vector.extract_strided_slice %179 {offsets = [0, 0], sizes = [16, 256], strides = [1, 1]} : vector<16x512xf32> to vector<16x256xf32>
    %181 = vector.extract_strided_slice %179 {offsets = [0, 256], sizes = [16, 256], strides = [1, 1]} : vector<16x512xf32> to vector<16x256xf32>
    %182 = arith.negf %180 : vector<16x256xf32>
    %183 = math.exp %182 : vector<16x256xf32>
    %cst_51 = arith.constant 1.000000e+00 : f32
    %184 = vector.broadcast %cst_51 : f32 to vector<16x256xf32>
    %185 = arith.addf %184, %183 : vector<16x256xf32>
    %186 = arith.divf %184, %185 : vector<16x256xf32>
    %187 = arith.mulf %180, %186 : vector<16x256xf32>
    %188 = arith.mulf %187, %181 : vector<16x256xf32>
    %189 = arith.truncf %188 : vector<16x256xf32> to vector<16x256xbf16>
    %c0_52 = arith.constant 0 : index
    %c0_53 = arith.constant 0 : index
    %190 = vector.load %arg12[%c0_52, %c0_53] : memref<256x128xbf16, #tpu.memory_space<vmem>>, vector<256x128xbf16>
    %cst_54 = arith.constant dense<0.000000e+00> : vector<16x128xf32>
    %191 = tpu.matmul %189, %190, %cst_54 {dimension_numbers = #tpu.dot_dimension_numbers<[1], [0], [0], [1], [0, 0, 1, 1], [], []>} : vector<16x256xbf16>, vector<256x128xbf16>, vector<16x128xf32> -> vector<16x128xf32>
    %192 = arith.addf %163, %191 : vector<16x128xf32>
    %c0_55 = arith.constant 0 : index
    %c0_56 = arith.constant 0 : index
    %193 = vector.load %arg14[%c0_55, %c0_56] : memref<16x128xf32, #tpu.memory_space<vmem>>, vector<16x128xf32>
    tpu.vector_store %arg14[%c0_55, %c0_56], %192 {strides = array<i32>} : memref<16x128xf32, #tpu.memory_space<vmem>>, vector<16x128xf32>,
    return
  }
  func.func @transform_0(%arg0: i32) -> (i32, i32) {
    %c0_i32 = arith.constant 0 : i32
    %c0_i32_0 = arith.constant 0 : i32
    %c0_i32_1 = arith.constant 0 : i32
    return %c0_i32, %c0_i32_0 : i32, i32
  }
  func.func @transform_1(%arg0: i32) -> (i32, i32) {
    %c0_i32 = arith.constant 0 : i32
    %c0_i32_0 = arith.constant 0 : i32
    %c0_i32_1 = arith.constant 0 : i32
    return %c0_i32, %c0_i32_0 : i32, i32
  }
  func.func @transform_2(%arg0: i32) -> (i32, i32) {
    %c0_i32 = arith.constant 0 : i32
    %c0_i32_0 = arith.constant 0 : i32
    %c0_i32_1 = arith.constant 0 : i32
    return %c0_i32, %c0_i32_0 : i32, i32
  }
  func.func @transform_3(%arg0: i32) -> (i32, i32) {
    %c0_i32 = arith.constant 0 : i32
    %c0_i32_0 = arith.constant 0 : i32
    %c0_i32_1 = arith.constant 0 : i32
    return %c0_i32, %c0_i32_0 : i32, i32
  }
  func.func @transform_4(%arg0: i32) -> (i32, i32) {
    %c0_i32 = arith.constant 0 : i32
    %c0_i32_0 = arith.constant 0 : i32
    %c0_i32_1 = arith.constant 0 : i32
    return %c0_i32, %c0_i32_0 : i32, i32
  }
  func.func @transform_5(%arg0: i32) -> (i32, i32) {
    %c0_i32 = arith.constant 0 : i32
    %c0_i32_0 = arith.constant 0 : i32
    %c0_i32_1 = arith.constant 0 : i32
    return %c0_i32, %c0_i32_0 : i32, i32
  }
  func.func @transform_6(%arg0: i32) -> (i32, i32) {
    %c0_i32 = arith.constant 0 : i32
    %c0_i32_0 = arith.constant 0 : i32
    %c0_i32_1 = arith.constant 0 : i32
    return %c0_i32, %c0_i32_0 : i32, i32
  }
  func.func @transform_7(%arg0: i32) -> (i32, i32) {
    %c0_i32 = arith.constant 0 : i32
    %c0_i32_0 = arith.constant 0 : i32
    %c0_i32_1 = arith.constant 0 : i32
    return %c0_i32, %c0_i32_0 : i32, i32
  }
  func.func @transform_8(%arg0: i32) -> (i32, i32) {
    %c0_i32 = arith.constant 0 : i32
    %c0_i32_0 = arith.constant 0 : i32
    %c0_i32_1 = arith.constant 0 : i32
    return %c0_i32, %c0_i32_0 : i32, i32
  }
  func.func @transform_9(%arg0: i32) -> (i32, i32) {
    %c0_i32 = arith.constant 0 : i32
    %c0_i32_0 = arith.constant 0 : i32
    %c0_i32_1 = arith.constant 0 : i32
    return %c0_i32, %c0_i32_0 : i32, i32
  }
  func.func @transform_10(%arg0: i32) -> (i32, i32) {
    %c0_i32 = arith.constant 0 : i32
    %c0_i32_0 = arith.constant 0 : i32
    %c0_i32_1 = arith.constant 0 : i32
    return %c0_i32, %c0_i32_0 : i32, i32
  }
  func.func @transform_11(%arg0: i32) -> (i32, i32) {
    %c0_i32 = arith.constant 0 : i32
    %c0_i32_0 = arith.constant 0 : i32
    %c0_i32_1 = arith.constant 0 : i32
    return %c0_i32, %c0_i32_0 : i32, i32
  }
  func.func @transform_12(%arg0: i32) -> (i32, i32) {
    %c0_i32 = arith.constant 0 : i32
    %c0_i32_0 = arith.constant 0 : i32
    %c0_i32_1 = arith.constant 0 : i32
    return %c0_i32, %c0_i32_0 : i32, i32
  }
  func.func @transform_13(%arg0: i32) -> (i32, i32) {
    %c0_i32 = arith.constant 0 : i32
    %c0_i32_0 = arith.constant 0 : i32
    %c0_i32_1 = arith.constant 0 : i32
    return %c0_i32, %c0_i32_0 : i32, i32
  }
}

</mosaic_0001>

<bundles_post_ra>
// kernel: tpu_custom_call.1
= control target key start
LH: loop header
LB: loop body
LE: loop exit
PB: predicated region body
PF: predicated region fallthrough
CT: control target
= control target key end

     0   :  { %18 = vsyncpa [#allocation3], 0  ;;  %s4670_s0 = inlined_call_operand.hbm [shape: f32[16,128], index: 0, kind: input, shape index: {}]   ;;  %s4671_s1 = inlined_call_operand.hbm [shape: f32[16,128], index: 1, kind: input, shape index: {}]   ;;  %s4672_s2 = inlined_call_operand.hbm [shape: f32[16,64], index: 2, kind: input, shape index: {}]   ;;  %s4673_s3 = inlined_call_operand.hbm [shape: f32[128,128], index: 3, kind: input, shape index: {}]   ;;  %s4674_s4 = inlined_call_operand.hbm [shape: f32[16,1024], index: 4, kind: input, shape index: {}]   ;;  %s4675_s5 = inlined_call_operand.vmem [shape: f32[1,128], index: 5, kind: input, shape index: {}]   ;;  %s4676_s6 = inlined_call_operand.hbm [shape: bf16[128,256], index: 6, kind: input, shape index: {}]   ;;  %s4677_s7 = inlined_call_operand.vmem [shape: f32[1,256], index: 7, kind: input, shape index: {}]   ;;  %s4678_s8 = inlined_call_operand.hbm [shape: bf16[1024,128], index: 8, kind: input, shape index: {}]   ;;  %s4679_s9 = inlined_call_operand.vmem [shape: f32[1,128], index: 9, kind: input, shape index: {}]   ;;  %s4680_s10 = inlined_call_operand.hbm [shape: bf16[128,512], index: 10, kind: input, shape index: {}]   ;;  %s4681_s11 = inlined_call_operand.hbm [shape: bf16[256,128], index: 11, kind: input, shape index: {}]   ;;  %s4682_s12 = inlined_call_operand.vmem [shape: f32[1,128], index: 12, kind: input, shape index: {}]   ;;  %s4683_s13 = inlined_call_operand.hbm [shape: f32[16,128], index: 13, kind: output, shape index: {}]  }
   0x1   :  { %19 = vsyncpa [#allocation6], 0 }
   0x2   :  { %20 = vsyncpa [#allocation9], 0 }
   0x3   :  { %21 = vsyncpa [#allocation12], 0 }
   0x4   :  { %22 = vsyncpa [#allocation15], 0 }
   0x5   :  { %23 = vsyncpa [#allocation4], 0  ;;  %s3649_s25 = smov [#allocation5]   ;;  %s3650_s27 = smov [#allocation8]  }
   0x6   :  { %s41_s26 = sshll.u32 %s3649_s25, 4  ;;  %s65_s28 = sshll.u32 %s3650_s27, 4  ;;  %s42_s26 = int_to_ptr.vmem [resolvable:$true] %s41_s26  ;;  %s3745_s28 = int_to_ptr.vmem [resolvable:$true] %s65_s28 }
   0x7   :  { %s3417_s12 = scalar_lea.hbm %s4671_s1, 256 }
   0x8   :  { %p3418_p0 = scmp.ne.s32.totalorder %s4671_s1, %s3417_s12  ;;  %p3421_p1 = scmp.lt.u32.totalorder %s3417_s12, %s4671_s1 }
   0xa   :  { %p3423_p2 = pnand %p3421_p1, %p3418_p0 }
   0xc   :  { %3426 = shalt.err (!%p3423_p2)
}
   0xd   :  { %s3427_s18 = scalar_lea.vmem %s42_s26, 256  ;;  %p3432_p4 = scmp.lt.s32.totalorder %s42_s26, %s42_s26 }
   0xe   :  { %p3428_p3 = scmp.ne.s32.totalorder %s42_s26, %s3427_s18  ;;  %p3433_p5 = scmp.lt.s32.totalorder %s3427_s18, %s3427_s18 }
  0x10   :  { %p3434_p6 = por %p3433_p5, %p3432_p4 }
  0x12   :  { %p3435_p7 = pnand %p3434_p6, %p3428_p3 }
  0x14   :  { %3438 = shalt.err (!%p3435_p7)
}
  0x15   :  { %s3651_s19 = smov 128   ;;  %s3652_s20 = smov 8  }
  0x16   :  { %47 = dma.hbm_to_vmem [thread:$0]  %s4671_s1, 256, %s42_s26, [#allocation6], %s3651_s19, %s3651_s19, %s3652_s20  }
  0x17   :  { %s3439_s25 = scalar_lea.hbm %s4673_s3, 2048 }
  0x18   :  { %p3440_p8 = scmp.ne.s32.totalorder %s4673_s3, %s3439_s25  ;;  %p3443_p9 = scmp.lt.u32.totalorder %s3439_s25, %s4673_s3 }
  0x1a   :  { %p3445_p10 = pnand %p3443_p9, %p3440_p8 }
  0x1c   :  { %3448 = shalt.err (!%p3445_p10)
}
  0x1d   :  { %s3449_s14 = scalar_lea.vmem %s3745_s28, 2048  ;;  %p3454_p12 = scmp.lt.s32.totalorder %s3745_s28, %s3745_s28 }
  0x1e   :  { %p3450_p11 = scmp.ne.s32.totalorder %s3745_s28, %s3449_s14  ;;  %p3455_p13 = scmp.lt.s32.totalorder %s3449_s14, %s3449_s14 }
  0x20   :  { %p3456_p0 = por %p3455_p13, %p3454_p12 }
  0x22   :  { %p3457_p1 = pnand %p3456_p0, %p3450_p11 }
  0x24   :  { %3460 = shalt.err (!%p3457_p1)
}
  0x25   :  { %71 = dma.hbm_to_vmem [thread:$0]  %s4673_s3, 2048, %s3745_s28, [#allocation9], %s3651_s19, %s3651_s19, %s3652_s20  }
  0x26   :  { %s3653_s15 = smov [#allocation11]   ;;  %s3654_s17 = smov [#allocation14]  }
  0x27   :  { %s91_s16 = sshll.u32 %s3653_s15, 4  ;;  %s119_s18 = sshll.u32 %s3654_s17, 4  ;;  %s92_s16 = int_to_ptr.vmem [resolvable:$true] %s91_s16  ;;  %s3782_s18 = int_to_ptr.vmem [resolvable:$true] %s119_s18 }
  0x28   :  { %s3461_s23 = scalar_lea.hbm %s4676_s6, 2048 }
  0x29   :  { %p3462_p2 = scmp.ne.s32.totalorder %s4676_s6, %s3461_s23  ;;  %p3465_p3 = scmp.lt.u32.totalorder %s3461_s23, %s4676_s6 }
  0x2b   :  { %p3467_p4 = pnand %p3465_p3, %p3462_p2 }
  0x2d   :  { %3470 = shalt.err (!%p3467_p4)
}
  0x2e   :  { %s3471_s3 = scalar_lea.vmem %s92_s16, 2048  ;;  %p3476_p6 = scmp.lt.s32.totalorder %s92_s16, %s92_s16 }
  0x2f   :  { %p3472_p5 = scmp.ne.s32.totalorder %s92_s16, %s3471_s3  ;;  %p3477_p7 = scmp.lt.s32.totalorder %s3471_s3, %s3471_s3 }
  0x31   :  { %p3478_p8 = por %p3477_p7, %p3476_p6 }
  0x33   :  { %p3479_p9 = pnand %p3478_p8, %p3472_p5 }
  0x35   :  { %3482 = shalt.err (!%p3479_p9)
}
  0x36   :  { %97 = dma.hbm_to_vmem [thread:$0]  %s4676_s6, 2048, %s92_s16, [#allocation12], %s3651_s19, %s3651_s19, %s3652_s20  }
  0x37   :  { %s3483_s1 = scalar_lea.hbm %s4680_s10, 4096 }
  0x38   :  { %p3484_p10 = scmp.ne.s32.totalorder %s4680_s10, %s3483_s1  ;;  %p3487_p11 = scmp.lt.u32.totalorder %s3483_s1, %s4680_s10 }
  0x3a   :  { %p3489_p12 = pnand %p3487_p11, %p3484_p10 }
  0x3c   :  { %3492 = shalt.err (!%p3489_p12)
}
  0x3d   :  { %s3493_s22 = scalar_lea.vmem %s3782_s18, 4096  ;;  %p3498_p0 = scmp.lt.s32.totalorder %s3782_s18, %s3782_s18 }
  0x3e   :  { %p3494_p13 = scmp.ne.s32.totalorder %s3782_s18, %s3493_s22  ;;  %p3499_p1 = scmp.lt.s32.totalorder %s3493_s22, %s3493_s22 }
  0x40   :  { %p3500_p2 = por %p3499_p1, %p3498_p0 }
  0x42   :  { %p3501_p3 = pnand %p3500_p2, %p3494_p13 }
  0x44   :  { %3504 = shalt.err (!%p3501_p3)
}
  0x45   :  { %s3655_s6 = smov 256   ;;  %s3656_s16 = smov 16  }
  0x46   :  { %125 = dma.hbm_to_vmem [thread:$0]  %s4680_s10, 4096, %s3782_s18, [#allocation15], %s3655_s6, %s3655_s6, %s3656_s16  }
  0x47   :  { %s3657_s25 = smov [#allocation2]   ;;  %s3658_s29 = smov [#allocation7]  }
  0x48   :  { %s29_s27 = sshll.u32 %s3657_s25, 4  ;;  %s53_s3 = sshll.u32 %s3658_s29, 4  ;;  %s30_s27 = int_to_ptr.vmem [resolvable:$true] %s29_s27  ;;  %s3817_s3 = int_to_ptr.vmem [resolvable:$true] %s53_s3 }
  0x49   :  { %s3505_s12 = scalar_lea.hbm %s4670_s0, 256 }
  0x4a   :  { %p3506_p4 = scmp.ne.s32.totalorder %s4670_s0, %s3505_s12  ;;  %p3509_p5 = scmp.lt.u32.totalorder %s3505_s12, %s4670_s0 }
  0x4c   :  { %p3511_p6 = pnand %p3509_p5, %p3506_p4 }
  0x4e   :  { %3514 = shalt.err (!%p3511_p6)
}
  0x4f   :  { %s3515_s10 = scalar_lea.vmem %s30_s27, 256  ;;  %p3520_p8 = scmp.lt.s32.totalorder %s30_s27, %s30_s27 }
  0x50   :  { %p3516_p7 = scmp.ne.s32.totalorder %s30_s27, %s3515_s10  ;;  %p3521_p9 = scmp.lt.s32.totalorder %s3515_s10, %s3515_s10 }
  0x52   :  { %p3522_p10 = por %p3521_p9, %p3520_p8 }
  0x54   :  { %p3523_p11 = pnand %p3522_p10, %p3516_p7 }
  0x56   :  { %3526 = shalt.err (!%p3523_p11)
}
  0x57   :  { %35 = dma.hbm_to_vmem [thread:$0]  %s4670_s0, 256, %s30_s27, [#allocation3], %s3651_s19, %s3651_s19, %s3652_s20  }
  0x58   :  { %s3527_s6 = scalar_lea.hbm %s4672_s2, 256 }
  0x59   :  { %p3528_p12 = scmp.ne.s32.totalorder %s4672_s2, %s3527_s6  ;;  %p3531_p13 = scmp.lt.u32.totalorder %s3527_s6, %s4672_s2 }
  0x5b   :  { %p3533_p0 = pnand %p3531_p13, %p3528_p12 }
  0x5d   :  { %3536 = shalt.err (!%p3533_p0)
}
  0x5e   :  { %s3537_s28 = scalar_lea.vmem %s3817_s3, 256  ;;  %p3542_p2 = scmp.lt.s32.totalorder %s3817_s3, %s3817_s3 }
  0x5f   :  { %p3538_p1 = scmp.ne.s32.totalorder %s3817_s3, %s3537_s28  ;;  %p3543_p3 = scmp.lt.s32.totalorder %s3537_s28, %s3537_s28 }
  0x61   :  { %p3544_p4 = por %p3543_p3, %p3542_p2 }
  0x63   :  { %p3545_p5 = pnand %p3544_p4, %p3538_p1 }
  0x65   :  { %3548 = shalt.err (!%p3545_p5)
}
  0x66   :  { %59 = dma.hbm_to_vmem [thread:$0]  %s4672_s2, 256, %s3817_s3, [#allocation6], %s3651_s19, %s3651_s19, %s3652_s20  }
  0x67   :  { %s3659_s30 = smov [#allocation10]   ;;  %s3549_s26 = scalar_lea.hbm %s4674_s4, 2048 }
  0x68   :  { %s77_s12 = sshll.u32 %s3659_s30, 4  ;;  %p3550_p6 = scmp.ne.s32.totalorder %s4674_s4, %s3549_s26  ;;  %s78_s12 = int_to_ptr.vmem [resolvable:$true] %s77_s12 }
  0x69   :  { %p3553_p7 = scmp.lt.u32.totalorder %s3549_s26, %s4674_s4 }
  0x6b   :  { %p3555_p8 = pnand %p3553_p7, %p3550_p6 }
  0x6d   :  { %3558 = shalt.err (!%p3555_p8)
}
  0x6e   :  { %s3559_s21 = scalar_lea.vmem %s78_s12, 2048  ;;  %p3564_p10 = scmp.lt.s32.totalorder %s78_s12, %s78_s12 }
  0x6f   :  { %p3560_p9 = scmp.ne.s32.totalorder %s78_s12, %s3559_s21  ;;  %p3565_p11 = scmp.lt.s32.totalorder %s3559_s21, %s3559_s21 }
  0x71   :  { %p3566_p12 = por %p3565_p11, %p3564_p10 }
  0x73   :  { %p3567_p13 = pnand %p3566_p12, %p3560_p9 }
  0x75   :  { %3570 = shalt.err (!%p3567_p13)
}
  0x76   :  { %s3660_s2 = smov 1024   ;;  %s3661_s3 = smov 64  }
  0x77   :  { %83 = dma.hbm_to_vmem [thread:$0]  %s4674_s4, 2048, %s78_s12, [#allocation9], %s3660_s2, %s3660_s2, %s3661_s3  }
  0x78   :  { %s3662_s23 = smov [#allocation13]   ;;  %s3571_s28 = scalar_lea.hbm %s4678_s8, 8192 }
  0x79   :  { %s105_s24 = sshll.u32 %s3662_s23, 4  ;;  %p3572_p0 = scmp.ne.s32.totalorder %s4678_s8, %s3571_s28  ;;  %s106_s24 = int_to_ptr.vmem [resolvable:$true] %s105_s24 }
  0x7a   :  { %p3575_p1 = scmp.lt.u32.totalorder %s3571_s28, %s4678_s8 }
  0x7c   :  { %p3577_p2 = pnand %p3575_p1, %p3572_p0 }
  0x7e   :  { %3580 = shalt.err (!%p3577_p2)
}
  0x7f   :  { %s3581_s1 = scalar_lea.vmem %s106_s24, 8192  ;;  %p3586_p4 = scmp.lt.s32.totalorder %s106_s24, %s106_s24 }
  0x80   :  { %p3582_p3 = scmp.ne.s32.totalorder %s106_s24, %s3581_s1  ;;  %p3587_p5 = scmp.lt.s32.totalorder %s3581_s1, %s3581_s1 }
  0x82   :  { %p3588_p6 = por %p3587_p5, %p3586_p4 }
  0x84   :  { %p3589_p7 = pnand %p3588_p6, %p3582_p3 }
  0x86   :  { %3592 = shalt.err (!%p3589_p7)
}
  0x87   :  { %s3663_s4 = smov 4   ;;  %s3664_s15 = smov [#allocation16]  }
  0x88   :  { %111 = dma.hbm_to_vmem [thread:$0]  %s4678_s8, 8192, %s106_s24, [#allocation12], %s3661_s3, %s3661_s3, %s3663_s4  }
  0x89   :  { %s131_s10 = sshll.u32 %s3664_s15, 4  ;;  %s3593_s21 = scalar_lea.hbm %s4681_s11, 2048  ;;  %s132_s10 = int_to_ptr.vmem [resolvable:$true] %s131_s10 }
  0x8a   :  { %p3594_p8 = scmp.ne.s32.totalorder %s4681_s11, %s3593_s21  ;;  %p3597_p9 = scmp.lt.u32.totalorder %s3593_s21, %s4681_s11 }
  0x8c   :  { %p3599_p10 = pnand %p3597_p9, %p3594_p8 }
  0x8e   :  { %3602 = shalt.err (!%p3599_p10)
}
  0x8f   :  { %s3603_s25 = scalar_lea.vmem %s132_s10, 2048  ;;  %p3608_p12 = scmp.lt.s32.totalorder %s132_s10, %s132_s10 }
  0x90   :  { %p3604_p11 = scmp.ne.s32.totalorder %s132_s10, %s3603_s25  ;;  %p3609_p13 = scmp.lt.s32.totalorder %s3603_s25, %s3603_s25 }
  0x92   :  { %p3610_p0 = por %p3609_p13, %p3608_p12 }
  0x94   :  { %p3611_p1 = pnand %p3610_p0, %p3604_p11 }
  0x96   :  { %3614 = shalt.err (!%p3611_p1)
}
  0x97   :  { %137 = dma.hbm_to_vmem [thread:$0]  %s4681_s11, 2048, %s132_s10, [#allocation15], %s3661_s3, %s3661_s3, %s3663_s4  }
  0x98   :  { %3637 = dma.done.wait [#allocation3], 256  }
  0x99   :  { %3638 = vsyncadd [#allocation3], 4294967040 }
  0x9a   :  { %3639 = dma.done.wait [#allocation6], 512  }
  0x9b   :  { %3640 = vsyncadd [#allocation6], 4294966784 }
  0x9c   :  { %3641 = dma.done.wait [#allocation9], 4096  }
  0x9d   :  { %3642 = vsyncadd [#allocation9], 4294963200 }
  0x9e   :  { %3643 = dma.done.wait [#allocation12], 10240  }
  0x9f   :  { %3644 = vsyncadd [#allocation12], 4294957056 }
  0xa0   :  { %3645 = dma.done.wait [#allocation15], 6144  }
  0xa1   :  { %3646 = vsyncadd [#allocation15], 4294961152  ;;  %v168_v0 = vld [vmem:[#allocation2] sm:$0xff]  ;;  %v169_v1 = vld [vmem:[#allocation2 + $0x8] sm:$0xff]  ;;  %v3665_v17 = vmov 0   ;;  %v213_v35 = vlaneseq  ;;  %s3667_s27 = smov 56  }
  0xa2   :  { %v171_v2 = vmul.f32 %v168_v0, %v168_v0  ;;  %v3219_v3 = vld [vmem:[#allocation11 + $0x4] ss:$8 sps:$4 sm:$0xff]   ;;  %v3221_v4 = vld [vmem:[#allocation11] ss:$8 sps:$4 sm:$0xff]   ;;  %v3222_v5 = vld [vmem:[#allocation11 + $0x14] ss:$8 sps:$4 sm:$0xff]   ;;  %v172_v6 = vmul.f32 %v169_v1, %v169_v1  ;;  %335 = vmatprep.mubr.bf16.mxu0 %v3665_v17 }
  0xa3   :  { %303 = vmatprep.subr.bf16.mxu0 %v3219_v3  ;;  %v3224_v7 = vld [vmem:[#allocation11 + $0x10] ss:$8 sps:$4 sm:$0xff]   ;;  %v3225_v8 = vld [vmem:[#allocation11 + $0x24] ss:$8 sps:$4 sm:$0xff]   ;;  %v3227_v9 = vld [vmem:[#allocation11 + $0x20] ss:$8 sps:$4 sm:$0xff]  }
  0xa4   :  { %173 = vadd.xlane.f32.xlu0 %v171_v2  ;;  %304 = vmatpush1.bf16.msra.mxu0 %v3221_v4  ;;  %v3228_v10 = vld [vmem:[#allocation11 + $0x34] ss:$8 sps:$4 sm:$0xff]   ;;  %v3230_v11 = vld [vmem:[#allocation11 + $0x30] ss:$8 sps:$4 sm:$0xff]   ;;  %v3231_v12 = vld [vmem:[#allocation11 + $0x44] ss:$8 sps:$4 sm:$0xff]  }
  0xa5   :  { %305 = vmatprep.subr.bf16.mxu0 %v3222_v5  ;;  %v3233_v13 = vld [vmem:[#allocation11 + $0x40] ss:$8 sps:$4 sm:$0xff]   ;;  %v3234_v14 = vld [vmem:[#allocation11 + $0x54] ss:$8 sps:$4 sm:$0xff]   ;;  %v3236_v15 = vld [vmem:[#allocation11 + $0x50] ss:$8 sps:$4 sm:$0xff]  }
  0xa6   :  { %v3237_v16 = vld [vmem:[#allocation11 + $0x64] ss:$8 sps:$4 sm:$0xff]   ;;  %v3239_v18 = vld [vmem:[#allocation11 + $0x60] ss:$8 sps:$4 sm:$0xff]   ;;  %v3240_v19 = vld [vmem:[#allocation11 + $0x74] ss:$8 sps:$4 sm:$0xff]  }
  0xa7   :  { %v3242_v20 = vld [vmem:[#allocation11 + $0x70] ss:$8 sps:$4 sm:$0xff]   ;;  %v214_v36 = vshrl.u32 %v213_v35, 7  ;;  %v550_v50 = vld [vmem:[#allocation8] sm:$0xff]  ;;  %v551_v51 = vld [vmem:[#allocation8 + $0x8] sm:$0xff]  ;;  %v362_v54 = vand.u32 127, %v213_v35 }
  0xa8   :  { %175 = vadd.xlane.f32.xlu0 %v172_v6  ;;  %306 = vmatpush1.bf16.msra.mxu0 %v3224_v7  ;;  %v2609_v30 = vld [vmem:[%s4675_s5] ss:$0 sm:$0xff]  ;;  %s3666_s5 = smov 120   ;;  %v3926_v52 = vpack.c.bf16 %v551_v51, %v550_v50  ;;  %v553_v56 = vld [vmem:[#allocation8 + $0x18] sm:$0xff]  ;;  %vm400_vm0 = vcmask 457728   ;;  %v554_v60 = vld [vmem:[#allocation8 + $0x20] sm:$0xff] }
  0xa9   :  { %307 = vmatprep.subr.bf16.mxu0 %v3225_v8  ;;  %v219_v37 = vsub.s32 1, %v214_v36  ;;  %v211_v38 = vld [vmem:[%s4677_s7] sm:$0x3]  ;;  %v215_v40 = vsub.s32 0, %v214_v36  ;;  %s3668_s7 = smov 72   ;;  %v367_v59 = vand.u32 15, %v362_v54 }
  0xaa   :  { %3066 = vmatprep.subr.bf16.mxu1 %v3926_v52  ;;  %v552_v55 = vld [vmem:[#allocation8 + $0x10] sm:$0xff]  ;;  %v555_v61 = vld [vmem:[#allocation8 + $0x28] sm:$0xff]  ;;  %vm360_vm1 = vcmask 64512   ;;  %v557_v3 = vld [vmem:[#allocation8 + $0x38] sm:$0xff]  ;;  %s3669_s30 = smov 32   ;;  %s3670_s14 = smov 48  }
  0xab   :  { %v220_v39 = vrot.slane %v211_v38, %v219_v37  ;;  %v216_v46 = vrot.slane %v211_v38, %v215_v40  ;;  %3068 = vmatpush3.bf16.msra.mxu1 %v3926_v52  ;;  %v3932_v58 = vpack.c.bf16 %v553_v56, %v552_v55  ;;  %v3938_v63 = vpack.c.bf16 %v555_v61, %v554_v60  ;;  %v556_v2 = vld [vmem:[#allocation8 + $0x30] sm:$0xff]  ;;  %s3671_s1 = smov 112   ;;  %s3672_s4 = smov 80  }
  0xac   :  { %308 = vmatpush1.bf16.msra.mxu0 %v3227_v9  ;;  %vm3943_vm2 = vcmp.lt.s32.totalorder %v367_v59, 8  ;;  %v3949_v6 = vpack.c.bf16 %v557_v3, %v556_v2  ;;  %v423_v8 = vld [vmem:[#allocation7] sm:$0xff]  ;;  %s3673_s12 = smov 96   ;;  %vm471_vm3 = vcmask 130048   ;;  %vm474_vm4 = vcmask 261120  }
  0xad   :  { %309 = vmatprep.subr.bf16.mxu0 %v3228_v10  ;;  %3070 = vmatprep.subr.bf16.mxu1 %v3932_v58  ;;  %vm477_vm5 = vcmask 392192   ;;  %vm480_vm6 = vcmask 523264   ;;  %vm483_vm7 = vcmask 654336   ;;  %vm486_vm8 = vcmask 785408  }
  0xae   :  { %vm489_vm9 = vcmask 916480   ;;  %vm1242_vm10 = vcmask 1040384   ;;  %vm1251_vm11 = vcmask 1041408   ;;  %vm1260_vm12 = vcmask 1042432  }
  0xaf   :  { %3072 = vmatpush3.bf16.msra.mxu1 %v3932_v58  ;;  %vm1269_vm13 = vcmask 1043456   ;;  %vm1278_vm14 = vcmask 1044480   ;;  %vm1287_vm15 = vcmask 1045504  }
  0xb0   :  { %310 = vmatpush1.bf16.msra.mxu0 %v3230_v11  ;;  %3074 = vmatprep.subr.bf16.mxu1 %v3938_v63  ;;  %v558_v11 = vld [vmem:[#allocation8 + $0x40] sm:$0xff] }
  0xb1   :  { %311 = vmatprep.subr.bf16.mxu0 %v3231_v12  ;;  %v559_v12 = vld [vmem:[#allocation8 + $0x48] sm:$0xff] }
  0xb3   :  { %3076 = vmatpush3.bf16.msra.mxu1 %v3938_v63 }
  0xb4   :  { %312 = vmatpush1.bf16.msra.mxu0 %v3233_v13  ;;  %3078 = vmatprep.subr.bf16.mxu1 %v3949_v6 }
  0xb5   :  { %313 = vmatprep.subr.bf16.mxu0 %v3234_v14  ;;  %v3959_v14 = vpack.c.bf16 %v559_v12, %v558_v11  ;;  %v383_v12 = vld [vmem:[#allocation5 + $0x8] sm:$0xff] }
  0xb7   :  { %3080 = vmatpush3.bf16.msra.mxu1 %v3949_v6 }
  0xb8   :  { %314 = vmatpush1.bf16.msra.mxu0 %v3236_v15  ;;  %3082 = vmatprep.subr.bf16.mxu1 %v3959_v14 }
  0xb9   :  { %315 = vmatprep.subr.bf16.mxu0 %v3237_v16  ;;  %v560_v16 = vld [vmem:[#allocation8 + $0x50] sm:$0xff] }
  0xbb   :  { %3084 = vmatpush3.bf16.msra.mxu1 %v3959_v14 }
  0xbc   :  { %316 = vmatpush1.bf16.msra.mxu0 %v3239_v18  ;;  %v561_v18 = vld [vmem:[#allocation8 + $0x58] sm:$0xff] }
  0xbd   :  { %317 = vmatprep.subr.bf16.mxu0 %v3240_v19 }
  0xc0   :  { %318 = vmatpush1.bf16.msra.mxu0 %v3242_v20 }
  0xc1   :  { %3098 = vmatprep.subr.bf16.mxu0 %v3926_v52 }
 0x131   :  { %v174_v21 = vpop.xlane.xlu0 %173 }
 0x132   :  { %v178_v22 = vmul.f32 0.0078125, %v174_v21  ;;  %v3971_v21 = vpack.c.bf16 %v561_v18, %v560_v16  ;;  %v382_v18 = vld [vmem:[#allocation5] sm:$0xff] }
 0x134   :  { %v180_v23 = vadd.f32 1e-06, %v178_v22  ;;  %3086 = vmatprep.subr.bf16.mxu1 %v3971_v21 }
 0x135   :  { %v176_v24 = vpop.xlane.xlu0 %175  ;;  %3088 = vmatpush3.bf16.msra.mxu1 %v3971_v21 }
 0x136   :  { %3371 = vrsqrt.f32 %v180_v23  ;;  %v179_v25 = vmul.f32 0.0078125, %v176_v24  ;;  %v562_v23 = vld [vmem:[#allocation8 + $0x60] sm:$0xff]  ;;  %v563_v24 = vld [vmem:[#allocation8 + $0x68] sm:$0xff] }
 0x138   :  { %v181_v26 = vadd.f32 1e-06, %v179_v25 }
 0x13a   :  { %3373 = vrsqrt.f32 %v181_v26 }
 0x140   :  { %v3372_v27 = vpop.eup %3371 }
 0x141   :  { %v184_v28 = vmul.f32 %v3372_v27, %v168_v0  ;;  %v3982_v27 = vpack.c.bf16 %v563_v24, %v562_v23 }
 0x143   :  { %v192_v32 = vmul.f32 %v2609_v30, %v184_v28  ;;  %3090 = vmatprep.subr.bf16.mxu1 %v3982_v27 }
 0x144   :  { %v3374_v29 = vpop.eup %3373  ;;  %3092 = vmatpush3.bf16.msra.mxu1 %v3982_v27 }
 0x145   :  { %v185_v31 = vmul.f32 %v3374_v29, %v169_v1  ;;  %v424_v29 = vld [vmem:[#allocation7 + $0x8] sm:$0xff] }
 0x147   :  { %v193_v33 = vmul.f32 %v2609_v30, %v185_v31 }
 0x149   :  { %v194_v34 = vpack.c.bf16 %v193_v33, %v192_v32  ;;  %v564_v33 = vld [vmem:[#allocation8 + $0x70] sm:$0xff] }
 0x14b   :  { %336 = vmatmul.mubr.bf16.vlgmr.msra.gmra.mrb[0].mxu0 %v194_v34  ;;  %v565_v34 = vld [vmem:[#allocation8 + $0x78] sm:$0xff] }
 0x14c   :  { %3100 = vmatpush3.bf16.msra.mxu0 %v3926_v52  ;;  %v4001_v35 = vpack.c.bf16 %v565_v34, %v564_v33 }
 0x14d   :  { %3102 = vmatprep.subr.bf16.mxu0 %v3932_v58 }
 0x14e   :  { %3094 = vmatprep.subr.bf16.mxu1 %v4001_v35 }
 0x14f   :  { %3096 = vmatpush3.bf16.msra.mxu1 %v4001_v35 }
 0x150   :  { %3104 = vmatpush3.bf16.msra.mxu0 %v3932_v58  ;;  %3130 = vmatprep.subr.bf16.mxu1 %v3926_v52 }
 0x151   :  { %3106 = vmatprep.subr.bf16.mxu0 %v3938_v63 }
 0x154   :  { %3108 = vmatpush3.bf16.msra.mxu0 %v3938_v63 }
 0x155   :  { %3110 = vmatprep.subr.bf16.mxu0 %v3949_v6 }
 0x158   :  { %3112 = vmatpush3.bf16.msra.mxu0 %v3949_v6 }
 0x159   :  { %3114 = vmatprep.subr.bf16.mxu0 %v3959_v14 }
 0x15c   :  { %3116 = vmatpush3.bf16.msra.mxu0 %v3959_v14 }
 0x15d   :  { %3118 = vmatprep.subr.bf16.mxu0 %v3971_v21 }
 0x160   :  { %3120 = vmatpush3.bf16.msra.mxu0 %v3971_v21 }
 0x161   :  { %3122 = vmatprep.subr.bf16.mxu0 %v3982_v27 }
 0x164   :  { %3124 = vmatpush3.bf16.msra.mxu0 %v3982_v27 }
 0x165   :  { %3126 = vmatprep.subr.bf16.mxu0 %v4001_v35 }
 0x168   :  { %3128 = vmatpush3.bf16.msra.mxu0 %v4001_v35 }
 0x169   :  { %3162 = vmatprep.subr.bf16.mxu0 %v3926_v52 }
 0x21e   :  { %v337_v41 = vpop.f32.mrb[0].mxu0 }
 0x21f   :  { %v339_v42 = vpop.f32.mrb[1].mxu0  ;;  %v3908_v48 = vadd.f32 %v337_v41, %v216_v46 }
 0x220   :  { %v3902_v43 = vadd.f32 %v339_v42, %v220_v39  ;;  %v341_v44 = vpop.f32.mrb[2].mxu0 }
 0x221   :  { %v343_v45 = vpop.f32.mrb[3].mxu0  ;;  %v3913_v49 = vadd.f32 %v341_v44, %v216_v46 }
 0x222   :  { %v3904_v47 = vadd.f32 %v343_v45, %v220_v39  ;;  %388 = vrot.lane.b32.xlu1 %v3902_v43, %s3666_s5 }
 0x224   :  { %390 = vrot.lane.b32.xlu0 %v3904_v47, %s3666_s5 }
 0x226   :  { %394 = vrot.lane.b32.xlu1 %v3902_v43, %s3667_s27 }
 0x228   :  { %354 = vrot.lane.b32.xlu0 %v3908_v48, %s3652_s20 }
 0x22a   :  { %403 = vrot.lane.b32.xlu1 %v3902_v43, %s3668_s7 }
 0x22c   :  { %356 = vrot.lane.b32.xlu0 %v3913_v49, %s3652_s20 }
 0x22e   :  { %409 = vrot.lane.b32.xlu1 %v3902_v43, %s3652_s20 }
 0x232   :  { %396 = vrot.lane.b32.xlu1 %v3904_v47, %s3667_s27 }
 0x236   :  { %405 = vrot.lane.b32.xlu1 %v3904_v47, %s3668_s7 }
 0x23a   :  { %411 = vrot.lane.b32.xlu1 %v3904_v47, %s3652_s20 }
 0x23e   :  { %348 = vrot.lane.b32.xlu1 %v3908_v48, %s3666_s5 }
 0x242   :  { %350 = vrot.lane.b32.xlu1 %v3913_v49, %s3666_s5 }
 0x294   :  { %v389_v53 = vpop.permute.xlu1 %388 }
 0x296   :  { %v391_v19 = vpop.permute.xlu0 %390 }
 0x298   :  { %v395_v57 = vpop.permute.xlu1 %394 }
 0x299   :  { %v401_v0 = vsel %vm400_vm0, %v389_v53, %v395_v57 }
 0x29a   :  { %v417_v4 = vsub.f32 0.0, %v401_v0  ;;  %v355_v36 = vpop.permute.xlu0 %354 }
 0x29c   :  { %v404_v62 = vpop.permute.xlu1 %403 }
 0x29e   :  { %v357_v38 = vpop.permute.xlu0 %356 }
 0x2a0   :  { %v410_v5 = vpop.permute.xlu1 %409 }
 0x2a1   :  { %v415_v7 = vsel %vm360_vm1, %v404_v62, %v410_v5 }
 0x2a2   :  { %v419_v9 = vsel %vm3943_vm2, %v417_v4, %v415_v7 }
 0x2a3   :  { %v421_v10 = vadd.f32 %v419_v9, %v3902_v43 }
 0x2a4   :  { %v397_v13 = vpop.permute.xlu1 %396 }
 0x2a5   :  { %v3961_v15 = vmul.f32 %v423_v8, %v421_v10  ;;  %v402_v22 = vsel %vm400_vm0, %v391_v19, %v397_v13  ;;  %vm1296_vm0 = vcmask 1046528  }
 0x2a6   :  { %v418_v25 = vsub.f32 0.0, %v402_v22 }
 0x2a7   :  { %429 = vrot.lane.b32.xlu0 %v3961_v15, %s3656_s16  ;;  %435 = vrot.lane.b32.xlu1 %v3961_v15, %s3669_s30 }
 0x2a8   :  { %v406_v20 = vpop.permute.xlu1 %405 }
 0x2ab   :  { %441 = vrot.lane.b32.xlu0 %v3961_v15, %s3670_s14  ;;  %465 = vrot.lane.b32.xlu1 %v3961_v15, %s3671_s1 }
 0x2ac   :  { %v412_v26 = vpop.permute.xlu1 %411 }
 0x2ad   :  { %v416_v28 = vsel %vm360_vm1, %v406_v20, %v412_v26 }
 0x2ae   :  { %v420_v30 = vsel %vm3943_vm2, %v418_v25, %v416_v28 }
 0x2af   :  { %v422_v31 = vadd.f32 %v420_v30, %v3904_v47  ;;  %447 = vrot.lane.b32.xlu0 %v3961_v15, %s3661_s3  ;;  %453 = vrot.lane.b32.xlu1 %v3961_v15, %s3672_s4 }
 0x2b0   :  { %v349_v37 = vpop.permute.xlu1 %348 }
 0x2b1   :  { %v3995_v32 = vmul.f32 %v424_v29, %v422_v31  ;;  %v376_v55 = vsub.f32 0.0, %v349_v37 }
 0x2b3   :  { %431 = vrot.lane.b32.xlu0 %v3995_v32, %s3656_s16  ;;  %437 = vrot.lane.b32.xlu1 %v3995_v32, %s3669_s30  ;;  %v378_v0 = vsel %vm3943_vm2, %v376_v55, %v355_v36 }
 0x2b4   :  { %v351_v39 = vpop.permute.xlu1 %350  ;;  %v380_v11 = vadd.f32 %v378_v0, %v3908_v48 }
 0x2b5   :  { %v377_v54 = vsub.f32 0.0, %v351_v39 }
 0x2b6   :  { %v384_v33 = vmul.f32 %v382_v18, %v380_v11 }
 0x2b7   :  { %449 = vrot.lane.b32.xlu0 %v3995_v32, %s3661_s3  ;;  %443 = vrot.lane.b32.xlu1 %v3995_v32, %s3670_s14  ;;  %v379_v61 = vsel %vm3943_vm2, %v377_v54, %v357_v38 }
 0x2b8   :  { %v381_v1 = vadd.f32 %v379_v61, %v3913_v49 }
 0x2ba   :  { %v4114_v28 = vmul.f32 %v383_v12, %v381_v1 }
 0x2bb   :  { %455 = vrot.lane.b32.xlu0 %v3995_v32, %s3672_s4  ;;  %467 = vrot.lane.b32.xlu1 %v3995_v32, %s3671_s1 }
 0x2bf   :  { %461 = vrot.lane.b32.xlu0 %v3995_v32, %s3673_s12  ;;  %459 = vrot.lane.b32.xlu1 %v3961_v15, %s3673_s12 }
 0x2c3   :  { %494 = vrot.lane.b32.xlu0 %v3904_v47, %s3661_s3  ;;  %492 = vrot.lane.b32.xlu1 %v3902_v43, %s3661_s3 }
 0x2c7   :  { %500 = vrot.lane.b32.xlu0 %v3904_v47, %s3672_s4  ;;  %498 = vrot.lane.b32.xlu1 %v3902_v43, %s3672_s4 }
 0x2cb   :  { %530 = vrot.lane.b32.xlu0 %v3904_v47, %s3670_s14  ;;  %528 = vrot.lane.b32.xlu1 %v3902_v43, %s3670_s14 }
 0x2cf   :  { %506 = vrot.lane.b32.xlu0 %v3904_v47, %s3673_s12  ;;  %504 = vrot.lane.b32.xlu1 %v3902_v43, %s3673_s12 }
 0x2d3   :  { %512 = vrot.lane.b32.xlu0 %v3904_v47, %s3671_s1  ;;  %510 = vrot.lane.b32.xlu1 %v3902_v43, %s3671_s1 }
 0x2d7   :  { %524 = vrot.lane.b32.xlu0 %v3904_v47, %s3669_s30  ;;  %522 = vrot.lane.b32.xlu1 %v3902_v43, %s3669_s30 }
 0x2db   :  { %518 = vrot.lane.b32.xlu0 %v3904_v47, %s3656_s16  ;;  %516 = vrot.lane.b32.xlu1 %v3902_v43, %s3656_s16 }
 0x319   :  { %v4042_v40 = vpop.permute.xlu0 %429  ;;  %v4044_v41 = vpop.permute.xlu1 %435 }
 0x31a   :  { %v472_v2 = vsel %vm471_vm3, %v3961_v15, %v4042_v40 }
 0x31b   :  { %v475_v13 = vsel %vm474_vm4, %v472_v2, %v4044_v41 }
 0x31d   :  { %v4046_v42 = vpop.permute.xlu0 %441  ;;  %v4048_v44 = vpop.permute.xlu1 %465 }
 0x31e   :  { %v641_v53 = vsel %vm471_vm3, %v4048_v44, %v3961_v15  ;;  %v478_v49 = vsel %vm477_vm5, %v475_v13, %v4046_v42 }
 0x31f   :  { %v643_v56 = vsel %vm474_vm4, %v641_v53, %v4042_v40 }
 0x320   :  { %v645_v62 = vsel %vm477_vm5, %v643_v56, %v4044_v41 }
 0x321   :  { %v4050_v45 = vpop.permute.xlu0 %447  ;;  %v4052_v46 = vpop.permute.xlu1 %453  ;;  %v647_v9 = vsel %vm480_vm6, %v645_v62, %v4046_v42 }
 0x322   :  { %v481_v23 = vsel %vm480_vm6, %v478_v49, %v4050_v45  ;;  %v649_v24 = vsel %vm483_vm7, %v647_v9, %v4050_v45 }
 0x323   :  { %v651_v37 = vsel %vm486_vm8, %v649_v24, %v4052_v46  ;;  %v484_v55 = vsel %vm483_vm7, %v481_v23, %v4052_v46 }
 0x325   :  { %v4054_v50 = vpop.permute.xlu0 %431  ;;  %v4056_v51 = vpop.permute.xlu1 %437 }
 0x326   :  { %v473_v60 = vsel %vm471_vm3, %v3995_v32, %v4054_v50 }
 0x327   :  { %v476_v3 = vsel %vm474_vm4, %v473_v60, %v4056_v51 }
 0x329   :  { %v4063_v57 = vpop.permute.xlu0 %449  ;;  %v4065_v59 = vpop.permute.xlu1 %443 }
 0x32a   :  { %v479_v7 = vsel %vm477_vm5, %v476_v3, %v4065_v59 }
 0x32b   :  { %v482_v19 = vsel %vm480_vm6, %v479_v7, %v4063_v57 }
 0x32d   :  { %v4081_v4 = vpop.permute.xlu0 %455  ;;  %v4083_v5 = vpop.permute.xlu1 %467 }
 0x32e   :  { %v642_v8 = vsel %vm471_vm3, %v4083_v5, %v3995_v32  ;;  %v485_v25 = vsel %vm483_vm7, %v482_v19, %v4081_v4 }
 0x32f   :  { %v644_v10 = vsel %vm474_vm4, %v642_v8, %v4054_v50 }
 0x330   :  { %v646_v16 = vsel %vm477_vm5, %v644_v10, %v4056_v51 }
 0x331   :  { %v462_v20 = vpop.permute.xlu0 %461  ;;  %v648_v48 = vsel %vm480_vm6, %v646_v16, %v4065_v59  ;;  %v460_v22 = vpop.permute.xlu1 %459 }
 0x332   :  { %v650_v26 = vsel %vm483_vm7, %v648_v48, %v4063_v57  ;;  %v488_v29 = vsel %vm486_vm8, %v485_v25, %v462_v20  ;;  %v746_v31 = vsel %vm471_vm3, %v460_v22, %v4048_v44  ;;  %v851_v56 = vsel %vm471_vm3, %v4052_v46, %v460_v22 }
 0x333   :  { %v652_v30 = vsel %vm486_vm8, %v650_v26, %v4081_v4  ;;  %v748_v36 = vsel %vm474_vm4, %v746_v31, %v3961_v15  ;;  %v653_v60 = vsel %vm489_vm9, %v651_v37, %v460_v22  ;;  %v487_v61 = vsel %vm486_vm8, %v484_v55, %v460_v22 }
 0x334   :  { %v654_v34 = vsel %vm489_vm9, %v652_v30, %v462_v20  ;;  %v750_v39 = vsel %vm477_vm5, %v748_v36, %v4042_v40  ;;  %v491_v62 = vsel %vm489_vm9, %v488_v29, %v4083_v5  ;;  %v853_v0 = vsel %vm474_vm4, %v851_v56, %v4048_v44 }
 0x335   :  { %v670_v38 = vmul.f32 %v654_v34, %v4114_v28  ;;  %v4129_v53 = vpop.permute.xlu0 %494  ;;  %v4131_v54 = vpop.permute.xlu1 %492  ;;  %v669_v2 = vmul.f32 %v653_v60, %v384_v33  ;;  %v490_v3 = vsel %vm489_vm9, %v487_v61, %v4048_v44  ;;  %v549_v7 = vmul.f32 %v491_v62, %v4114_v28 }
 0x336   :  { %v855_v8 = vsel %vm477_vm5, %v853_v0, %v3961_v15  ;;  %v548_v1 = vmul.f32 %v490_v3, %v384_v33  ;;  %v752_v9 = vsel %vm480_vm6, %v750_v39, %v4044_v41  ;;  %v852_v13 = vsel %vm471_vm3, %v4081_v4, %v462_v20 }
 0x337   :  { %2992 = vmatprep.mubr.f32.mxu0 %v669_v2  ;;  %v754_v12 = vsel %vm483_vm7, %v752_v9, %v4046_v42  ;;  %v857_v44 = vsel %vm480_vm6, %v855_v8, %v4042_v40  ;;  %v747_v19 = vsel %vm471_vm3, %v462_v20, %v4083_v5 }
 0x338   :  { %2957 = vmatprep.mubr.f32.mxu1 %v548_v1  ;;  %2993 = vmatmul.mubr.f32.vlgmr.msra.gmra.mrb[4].mxu0 %v670_v38  ;;  %v756_v15 = vsel %vm486_vm8, %v754_v12, %v4050_v45  ;;  %v859_v18 = vsel %vm483_vm7, %v857_v44, %v4044_v41 }
 0x339   :  { %v4150_v10 = vpop.permute.xlu0 %500  ;;  %v4152_v11 = vpop.permute.xlu1 %498  ;;  %2958 = vmatmul.mubr.f32.vlgmr.msra.gmra.mrb[0].mxu1 %v549_v7  ;;  %3164 = vmatpush3.bf16.msra.mxu0 %v3926_v52  ;;  %v758_v16 = vsel %vm489_vm9, %v756_v15, %v4052_v46  ;;  %v861_v49 = vsel %vm486_vm8, %v859_v18, %v4046_v42 }
 0x33a   :  { %3132 = vmatpush3.bf16.msra.mxu1 %v3926_v52  ;;  %3166 = vmatprep.subr.bf16.mxu0 %v3932_v58  ;;  %v774_v40 = vmul.f32 %v758_v16, %v384_v33  ;;  %v863_v48 = vsel %vm489_vm9, %v861_v49, %v4050_v45  ;;  %v854_v52 = vsel %vm474_vm4, %v852_v13, %v4083_v5 }
 0x33b   :  { %3134 = vmatprep.subr.bf16.mxu1 %v3932_v58  ;;  %v879_v41 = vmul.f32 %v863_v48, %v384_v33  ;;  %v749_v5 = vsel %vm474_vm4, %v747_v19, %v3995_v32  ;;  %v856_v24 = vsel %vm477_vm5, %v854_v52, %v3995_v32  ;;  %v535_v25 = vsel %vm471_vm3, %v4129_v53, %v4150_v10 }
 0x33c   :  { %3027 = vmatprep.mubr.f32.mxu1 %v774_v40  ;;  %v534_v26 = vsel %vm471_vm3, %v4131_v54, %v4152_v11  ;;  %v751_v34 = vsel %vm477_vm5, %v749_v5, %v4054_v50  ;;  %v858_v36 = vsel %vm480_vm6, %v856_v24, %v4054_v50 }
 0x33d   :  { %v4176_v46 = vpop.permute.xlu0 %530  ;;  %v4178_v22 = vpop.permute.xlu1 %528  ;;  %3168 = vmatpush3.bf16.msra.mxu0 %v3932_v58  ;;  %3062 = vmatprep.mubr.f32.mxu0 %v879_v41  ;;  %v753_v3 = vsel %vm480_vm6, %v751_v34, %v4056_v51  ;;  %v860_v1 = vsel %vm483_vm7, %v858_v36, %v4056_v51 }
 0x33e   :  { %v656_v42 = vsel %vm471_vm3, %v4176_v46, %v4129_v53  ;;  %v655_v20 = vsel %vm471_vm3, %v4178_v22, %v4131_v54  ;;  %3136 = vmatpush3.bf16.msra.mxu1 %v3932_v58  ;;  %3170 = vmatprep.subr.bf16.mxu0 %v3938_v63  ;;  %v862_v16 = vsel %vm486_vm8, %v860_v1, %v4065_v59  ;;  %v3260_v1 = vld [vmem:[#allocation13 + $0xe0] sm:$0xff]  }
 0x33f   :  { %v658_v45 = vsel %vm474_vm4, %v656_v42, %v4150_v10  ;;  %v657_v23 = vsel %vm474_vm4, %v655_v20, %v4152_v11  ;;  %3138 = vmatprep.subr.bf16.mxu1 %v3938_v63 }
 0x341   :  { %v4206_v29 = vpop.permute.xlu0 %506  ;;  %v4208_v30 = vpop.permute.xlu1 %504  ;;  %3172 = vmatpush3.bf16.msra.mxu0 %v3938_v63 }
 0x342   :  { %v537_v58 = vsel %vm474_vm4, %v535_v25, %v4206_v29  ;;  %v660_v32 = vsel %vm477_vm5, %v658_v45, %v4206_v29  ;;  %v536_v31 = vsel %vm474_vm4, %v534_v26, %v4208_v30  ;;  %v659_v33 = vsel %vm477_vm5, %v657_v23, %v4208_v30  ;;  %3140 = vmatpush3.bf16.msra.mxu1 %v3938_v63 }
 0x343   :  { %3174 = vmatprep.subr.bf16.mxu0 %v3949_v6  ;;  %3142 = vmatprep.subr.bf16.mxu1 %v3949_v6 }
 0x345   :  { %v513_v37 = vpop.permute.xlu0 %512  ;;  %v4226_v38 = vpop.permute.xlu1 %510  ;;  %3176 = vmatpush3.bf16.msra.mxu0 %v3949_v6 }
 0x346   :  { %v539_v39 = vsel %vm477_vm5, %v537_v58, %v513_v37  ;;  %v662_v55 = vsel %vm480_vm6, %v660_v32, %v513_v37  ;;  %v538_v63 = vsel %vm477_vm5, %v536_v31, %v4226_v38  ;;  %v661_v56 = vsel %vm480_vm6, %v659_v33, %v4226_v38  ;;  %3144 = vmatpush3.bf16.msra.mxu1 %v3949_v6 }
 0x347   :  { %v541_v50 = vsel %vm480_vm6, %v539_v39, %v3904_v47  ;;  %v664_v60 = vsel %vm483_vm7, %v662_v55, %v3904_v47  ;;  %v540_v61 = vsel %vm480_vm6, %v538_v63, %v3902_v43  ;;  %v663_v62 = vsel %vm483_vm7, %v661_v56, %v3902_v43  ;;  %3178 = vmatprep.subr.bf16.mxu0 %v3959_v14  ;;  %v3244_v63 = vld [vmem:[#allocation13 + $0xc0] sm:$0xff]  }
 0x348   :  { %3146 = vmatprep.subr.bf16.mxu1 %v3959_v14  ;;  %v864_v39 = vsel %vm489_vm9, %v862_v16, %v4063_v57  ;;  %v3246_v56 = vld [vmem:[#allocation13 + $0x80] sm:$0xff]   ;;  %v3269_v16 = vld [vmem:[#allocation13 + $0x30] sm:$0xff]  }
 0x349   :  { %v525_v0 = vpop.permute.xlu0 %524  ;;  %v523_v2 = vpop.permute.xlu1 %522  ;;  %3180 = vmatpush3.bf16.msra.mxu0 %v3959_v14 }
 0x34a   :  { %v761_v7 = vsel %vm471_vm3, %v525_v0, %v4176_v46  ;;  %v760_v8 = vsel %vm471_vm3, %v523_v2, %v4178_v22  ;;  %3148 = vmatpush3.bf16.msra.mxu1 %v3959_v14  ;;  %3182 = vmatprep.subr.bf16.mxu0 %v3971_v21  ;;  %v755_v14 = vsel %vm483_vm7, %v753_v3, %v4065_v59  ;;  %v3257_v3 = vld [vmem:[#allocation13 + $0x18] sm:$0xff]  }
 0x34b   :  { %v763_v6 = vsel %vm474_vm4, %v761_v7, %v4129_v53  ;;  %v762_v9 = vsel %vm474_vm4, %v760_v8, %v4131_v54  ;;  %3150 = vmatprep.subr.bf16.mxu1 %v3971_v21  ;;  %v3258_v7 = vld [vmem:[#allocation13 + $0x98] sm:$0xff]   ;;  %v3259_v8 = vld [vmem:[#allocation13 + $0x60] sm:$0xff]  }
 0x34c   :  { %v765_v12 = vsel %vm477_vm5, %v763_v6, %v4150_v10  ;;  %v764_v44 = vsel %vm477_vm5, %v762_v9, %v4152_v11  ;;  %v3261_v6 = vld [vmem:[#allocation13 + $0x20] sm:$0xff]  }
 0x34d   :  { %v767_v51 = vsel %vm480_vm6, %v765_v12, %v4206_v29  ;;  %v519_v15 = vpop.permute.xlu0 %518  ;;  %v766_v13 = vsel %vm480_vm6, %v764_v44, %v4208_v30  ;;  %v517_v48 = vpop.permute.xlu1 %516  ;;  %3184 = vmatpush3.bf16.msra.mxu0 %v3971_v21  ;;  %v3262_v9 = vld [vmem:[#allocation13 + $0xa0] sm:$0xff]   ;;  %v3263_v12 = vld [vmem:[#allocation13 + $0x68] sm:$0xff]  }
 0x34e   :  { %v769_v18 = vsel %vm483_vm7, %v767_v51, %v513_v37  ;;  %v543_v40 = vsel %vm483_vm7, %v541_v50, %v519_v15  ;;  %v666_v49 = vsel %vm486_vm8, %v664_v60, %v519_v15  ;;  %v866_v19 = vsel %vm471_vm3, %v519_v15, %v525_v0  ;;  %3152 = vmatpush3.bf16.msra.mxu1 %v3971_v21  ;;  %v3249_v50 = vld [vmem:[#allocation13 + $0x8] sm:$0xff]  }
 0x34f   :  { %v771_v52 = vsel %vm486_vm8, %v769_v18, %v3904_v47  ;;  %v545_v41 = vsel %vm486_vm8, %v543_v40, %v525_v0  ;;  %v4283_v42 = vsel %vm489_vm9, %v666_v49, %v525_v0  ;;  %v868_v59 = vsel %vm474_vm4, %v866_v19, %v4176_v46  ;;  %3154 = vmatprep.subr.bf16.mxu1 %v3982_v27  ;;  %v3250_v60 = vld [vmem:[#allocation13 + $0x88] sm:$0xff]   ;;  %v3255_v0 = vld [vmem:[#allocation13 + $0x58] sm:$0xff]   ;;  %v3270_v18 = vld [vmem:[#allocation13 + $0xb0] sm:$0xff]  }
 0x350   :  { %v4290_v20 = vsel %vm489_vm9, %v545_v41, %v4176_v46  ;;  %v4293_v45 = vsel %vm489_vm9, %v771_v52, %v519_v15  ;;  %v870_v23 = vsel %vm477_vm5, %v868_v59, %v4129_v53  ;;  %v768_v5 = vsel %vm483_vm7, %v766_v13, %v4226_v38  ;;  %3186 = vmatprep.subr.bf16.mxu0 %v3982_v27  ;;  %v3264_v44 = vld [vmem:[#allocation13 + $0xe8] sm:$0xff]   ;;  %v3267_v13 = vld [vmem:[#allocation13 + $0x70] sm:$0xff]   ;;  %v3271_v40 = vld [vmem:[#allocation13 + $0x78] sm:$0xff]  }
 0x351   :  { %v872_v24 = vsel %vm480_vm6, %v870_v23, %v4150_v10  ;;  %v770_v25 = vsel %vm486_vm8, %v768_v5, %v3902_v43  ;;  %v542_v21 = vsel %vm483_vm7, %v540_v61, %v517_v48  ;;  %v665_v46 = vsel %vm486_vm8, %v663_v62, %v517_v48  ;;  %3188 = vmatpush3.bf16.msra.mxu0 %v3982_v27  ;;  %v3253_v61 = vld [vmem:[#allocation13 + $0x10] sm:$0xff]   ;;  %v3265_v51 = vld [vmem:[#allocation13 + $0x28] sm:$0xff]   ;;  %v3272_v49 = vld [vmem:[#allocation13 + $0xf8] sm:$0xff]  }
 0x352   :  { %v874_v26 = vsel %vm483_vm7, %v872_v24, %v4206_v29  ;;  %v544_v53 = vsel %vm486_vm8, %v542_v21, %v523_v2  ;;  %v4310_v58 = vsel %vm489_vm9, %v665_v46, %v523_v2  ;;  %v4313_v32 = vsel %vm489_vm9, %v770_v25, %v517_v48  ;;  %3156 = vmatpush3.bf16.msra.mxu1 %v3982_v27  ;;  %v3254_v62 = vld [vmem:[#allocation13 + $0x90] sm:$0xff]   ;;  %v3266_v15 = vld [vmem:[#allocation13 + $0xa8] sm:$0xff]   ;;  %v3273_v19 = vld [vmem:[#allocation13 + $0x38] sm:$0xff]  }
 0x353   :  { %v876_v10 = vsel %vm486_vm8, %v874_v26, %v513_v37  ;;  %v4319_v31 = vsel %vm489_vm9, %v544_v53, %v4178_v22  ;;  %v865_v33 = vsel %vm471_vm3, %v517_v48, %v523_v2  ;;  %v757_v29 = vsel %vm486_vm8, %v755_v14, %v4063_v57  ;;  %3190 = vmatprep.subr.bf16.mxu0 %v4001_v35  ;;  %v3256_v2 = vld [vmem:[#allocation13 + $0xd8] sm:$0xff]   ;;  %v3268_v14 = vld [vmem:[#allocation13 + $0xf0] sm:$0xff]   ;;  %v3275_v52 = vld [vmem:[#allocation13 + $0x140] sm:$0xff]  }
 0x354   :  { %v867_v34 = vsel %vm474_vm4, %v865_v33, %v4178_v22  ;;  %v4331_v36 = vsel %vm489_vm9, %v876_v10, %v3904_v47  ;;  %3158 = vmatprep.subr.bf16.mxu1 %v4001_v35  ;;  %v759_v27 = vsel %vm489_vm9, %v757_v29, %v4081_v4  ;;  %v3243_v4 = vld [vmem:[#allocation13 + $0x40] sm:$0xff]   ;;  %v3274_v48 = vld [vmem:[#allocation13 + $0xb8] sm:$0xff]  }
 0x355   :  { %v869_v37 = vsel %vm477_vm5, %v867_v34, %v4131_v54  ;;  %3192 = vmatpush3.bf16.msra.mxu0 %v4001_v35  ;;  %v880_v54 = vmul.f32 %v864_v39, %v4114_v28  ;;  %v775_v57 = vmul.f32 %v759_v27, %v4114_v28  ;;  %v3252_v28 = vld [vmem:[#allocation13 + $0xd0] sm:$0xff]   ;;  %v3276_v41 = vld [vmem:[#allocation13 + $0x1c0] sm:$0xff]  }
 0x356   :  { %v871_v55 = vsel %vm480_vm6, %v869_v37, %v4152_v11  ;;  %3160 = vmatpush3.bf16.msra.mxu1 %v4001_v35  ;;  %2837 = vmatprep.subr.bf16.mxu0 %v3244_v63  ;;  %v3248_v35 = vld [vmem:[#allocation13 + $0xc8] sm:$0xff]  }
 0x357   :  { %v873_v22 = vsel %vm483_vm7, %v871_v55, %v4208_v30  ;;  %v3245_v30 = vld [vmem:[#allocation13] sm:$0xff]   ;;  %2815 = vmatprep.subr.bf16.mxu1 %v3243_v4 }
 0x358   :  { %v875_v47 = vsel %vm486_vm8, %v873_v22, %v4226_v38  ;;  %3063 = vmatmul.mubr.f32.vlgmr.msra.gmra.mrb[6].mxu0 %v880_v54  ;;  %v3247_v38 = vld [vmem:[#allocation13 + $0x48] sm:$0xff]  }
 0x359   :  { %v4352_v11 = vsel %vm489_vm9, %v875_v47, %v3902_v43  ;;  %3028 = vmatmul.mubr.f32.vlgmr.msra.gmra.mrb[2].mxu1 %v775_v57  ;;  %2838 = vmatpush3.bf16.msra.mxu0 %v3246_v56  ;;  %v3251_v43 = vld [vmem:[#allocation13 + $0x50] sm:$0xff]  }
 0x35a   :  { %2816 = vmatpush3.bf16.msra.mxu1 %v3245_v30  ;;  %2839 = vmatprep.subr.bf16.mxu0 %v3248_v35 }
 0x35b   :  { %2817 = vmatprep.subr.bf16.mxu1 %v3247_v38 }
 0x35d   :  { %2840 = vmatpush3.bf16.msra.mxu0 %v3250_v60 }
 0x35e   :  { %2818 = vmatpush3.bf16.msra.mxu1 %v3249_v50  ;;  %2841 = vmatprep.subr.bf16.mxu0 %v3252_v28 }
 0x35f   :  { %2819 = vmatprep.subr.bf16.mxu1 %v3251_v43 }
 0x361   :  { %2842 = vmatpush3.bf16.msra.mxu0 %v3254_v62 }
 0x362   :  { %2820 = vmatpush3.bf16.msra.mxu1 %v3253_v61  ;;  %2843 = vmatprep.subr.bf16.mxu0 %v3256_v2 }
 0x363   :  { %2821 = vmatprep.subr.bf16.mxu1 %v3255_v0 }
 0x365   :  { %2844 = vmatpush3.bf16.msra.mxu0 %v3258_v7 }
 0x366   :  { %2822 = vmatpush3.bf16.msra.mxu1 %v3257_v3  ;;  %2845 = vmatprep.subr.bf16.mxu0 %v3260_v1 }
 0x367   :  { %2823 = vmatprep.subr.bf16.mxu1 %v3259_v8 }
 0x369   :  { %2846 = vmatpush3.bf16.msra.mxu0 %v3262_v9 }
 0x36a   :  { %2824 = vmatpush3.bf16.msra.mxu1 %v3261_v6  ;;  %2847 = vmatprep.subr.bf16.mxu0 %v3264_v44 }
 0x36b   :  { %2825 = vmatprep.subr.bf16.mxu1 %v3263_v12 }
 0x36d   :  { %2848 = vmatpush3.bf16.msra.mxu0 %v3266_v15 }
 0x36e   :  { %2826 = vmatpush3.bf16.msra.mxu1 %v3265_v51  ;;  %2849 = vmatprep.subr.bf16.mxu0 %v3268_v14 }
 0x36f   :  { %2827 = vmatprep.subr.bf16.mxu1 %v3267_v13 }
 0x371   :  { %2850 = vmatpush3.bf16.msra.mxu0 %v3270_v18 }
 0x372   :  { %2828 = vmatpush3.bf16.msra.mxu1 %v3269_v16  ;;  %2851 = vmatprep.subr.bf16.mxu0 %v3272_v49 }
 0x373   :  { %2829 = vmatprep.subr.bf16.mxu1 %v3271_v40 }
 0x375   :  { %2852 = vmatpush3.bf16.msra.mxu0 %v3274_v48 }
 0x376   :  { %2830 = vmatpush3.bf16.msra.mxu1 %v3273_v19  ;;  %2881 = vmatprep.subr.bf16.mxu0 %v3276_v41 }
 0x377   :  { %2859 = vmatprep.subr.bf16.mxu1 %v3275_v52 }
 0x40b   :  { %v2994_v59 = vpop.f32.mrb[4].mxu0 }
 0x40c   :  { %v2959_v23 = vpop.f32.mrb[0].mxu1  ;;  %v737_v5 = vpop.f32.mrb[5].mxu0 }
 0x40d   :  { %v957_v24 = vmax.f32 %v2959_v23, %v2994_v59  ;;  %v632_v25 = vpop.f32.mrb[1].mxu1 }
 0x40e   :  { %v956_v21 = vmax.f32 %v632_v25, %v737_v5 }
 0x42b   :  { %v3064_v46 = vpop.f32.mrb[6].mxu0 }
 0x42c   :  { %v3029_v26 = vpop.f32.mrb[2].mxu1  ;;  %v947_v53 = vpop.f32.mrb[7].mxu0 }
 0x42d   :  { %v959_v10 = vmax.f32 %v957_v24, %v3029_v26  ;;  %v842_v33 = vpop.f32.mrb[3].mxu1 }
 0x42e   :  { %v958_v29 = vmax.f32 %v956_v21, %v842_v33 }
 0x42f   :  { %v961_v34 = vmax.f32 %v959_v10, %v3064_v46 }
 0x430   :  { %v960_v37 = vmax.f32 %v958_v29, %v947_v53 }
 0x431   :  { %v963_v39 = vsub.f32 %v2959_v23, %v961_v34  ;;  %v969_v55 = vsub.f32 %v2994_v59, %v961_v34  ;;  %v975_v27 = vsub.f32 %v3029_v26, %v961_v34  ;;  %v981_v22 = vsub.f32 %v3064_v46, %v961_v34 }
 0x432   :  { %v962_v47 = vsub.f32 %v632_v25, %v960_v37  ;;  %v968_v54 = vsub.f32 %v737_v5, %v960_v37  ;;  %v974_v57 = vsub.f32 %v842_v33, %v960_v37  ;;  %v980_v4 = vsub.f32 %v947_v53, %v960_v37 }
 0x433   :  { %v966_v63 = vmul.f32 1.442695, %v963_v39  ;;  %v972_v30 = vmul.f32 1.442695, %v969_v55  ;;  %v978_v56 = vmul.f32 1.442695, %v975_v27 }
 0x434   :  { %v984_v38 = vmul.f32 1.442695, %v981_v22  ;;  %v964_v35 = vmul.f32 1.442695, %v962_v47  ;;  %v970_v50 = vmul.f32 1.442695, %v968_v54 }
 0x435   :  { %3375 = vpow2.f32 %v966_v63  ;;  %v976_v60 = vmul.f32 1.442695, %v974_v57  ;;  %v982_v43 = vmul.f32 1.442695, %v980_v4 }
 0x436   :  { %3377 = vpow2.f32 %v972_v30 }
 0x437   :  { %3379 = vpow2.f32 %v978_v56 }
 0x438   :  { %3381 = vpow2.f32 %v984_v38 }
 0x439   :  { %3383 = vpow2.f32 %v964_v35 }
 0x43a   :  { %3385 = vpow2.f32 %v970_v50 }
 0x43b   :  { %3387 = vpow2.f32 %v976_v60 }
 0x43c   :  { %3389 = vpow2.f32 %v982_v43 }
 0x43f   :  { %v3376_v28 = vpop.eup %3375 }
 0x440   :  { %v3378_v61 = vpop.eup %3377 }
 0x441   :  { %v3380_v62 = vpop.eup %3379  ;;  %v987_v0 = vadd.f32 %v3378_v61, %v3376_v28 }
 0x442   :  { %v3382_v2 = vpop.eup %3381 }
 0x443   :  { %v3384_v3 = vpop.eup %3383  ;;  %v989_v7 = vadd.f32 %v3380_v62, %v987_v0 }
 0x444   :  { %v3386_v8 = vpop.eup %3385 }
 0x445   :  { %v991_v1 = vadd.f32 %v3382_v2, %v989_v7  ;;  %v986_v6 = vadd.f32 %v3386_v8, %v3384_v3  ;;  %v3388_v9 = vpop.eup %3387 }
 0x446   :  { %v3390_v44 = vpop.eup %3389 }
 0x447   :  { %3391 = vrcp.f32 %v991_v1  ;;  %v988_v12 = vadd.f32 %v3388_v9, %v986_v6 }
 0x449   :  { %v990_v51 = vadd.f32 %v3390_v44, %v988_v12 }
 0x44b   :  { %3393 = vrcp.f32 %v990_v51 }
 0x451   :  { %v3392_v15 = vpop.eup %3391 }
 0x452   :  { %v995_v13 = vmul.f32 %v3392_v15, %v3376_v28  ;;  %v999_v14 = vmul.f32 %v3392_v15, %v3378_v61  ;;  %v1005_v16 = vmul.f32 %v3392_v15, %v3380_v62  ;;  %v1011_v18 = vmul.f32 %v3392_v15, %v3382_v2 }
 0x454   :  { %v997_v40 = vmul.f32 %v995_v13, %v4290_v20  ;;  %v1001_v49 = vmul.f32 %v999_v14, %v4283_v42  ;;  %v1007_v19 = vmul.f32 %v1005_v16, %v4293_v45  ;;  %v1013_v48 = vmul.f32 %v1011_v18, %v4331_v36  ;;  %v1370_v13 = vld [vmem:[#allocation10 + $0x48] sm:$0xff] }
 0x455   :  { %v3394_v52 = vpop.eup %3393 }
 0x456   :  { %v1003_v41 = vadd.f32 %v1001_v49, %v997_v40  ;;  %v994_v59 = vmul.f32 %v3394_v52, %v3384_v3  ;;  %v998_v23 = vmul.f32 %v3394_v52, %v3386_v8  ;;  %v1004_v5 = vmul.f32 %v3394_v52, %v3388_v9 }
 0x457   :  { %v1010_v24 = vmul.f32 %v3394_v52, %v3390_v44 }
 0x458   :  { %v1009_v25 = vadd.f32 %v1007_v19, %v1003_v41  ;;  %v996_v21 = vmul.f32 %v994_v59, %v4319_v31  ;;  %v1000_v46 = vmul.f32 %v998_v23, %v4310_v58  ;;  %v1006_v26 = vmul.f32 %v1004_v5, %v4313_v32  ;;  %v1362_v5 = vld [vmem:[#allocation10 + $0x8] sm:$0xff] }
 0x459   :  { %v1012_v20 = vmul.f32 %v1010_v24, %v4352_v11 }
 0x45a   :  { %v4362_v42 = vadd.f32 %v1013_v48, %v1009_v25  ;;  %v1002_v45 = vadd.f32 %v1000_v46, %v996_v21 }
 0x45c   :  { %v4365_v36 = vrot.slane %v4362_v42, 1  ;;  %v4368_v53 = vrot.slane %v4362_v42, 2  ;;  %v4371_v31 = vrot.slane %v4362_v42, 3  ;;  %v4374_v58 = vrot.slane %v4362_v42, 4 }
 0x45d   :  { %v4377_v32 = vrot.slane %v4362_v42, 5  ;;  %v4380_v11 = vrot.slane %v4362_v42, 6  ;;  %v4383_v10 = vrot.slane %v4362_v42, 7  ;;  %v1008_v33 = vadd.f32 %v1006_v26, %v1002_v45 }
 0x45e   :  { %v1144_v29 = vrot.slane %v4365_v36, 7  ;;  %v1158_v34 = vrot.slane %v4365_v36, 6  ;;  %v1172_v37 = vrot.slane %v4365_v36, 5  ;;  %v1186_v39 = vrot.slane %v4365_v36, 4 }
 0x45f   :  { %v1014_v55 = vadd.f32 %v1012_v20, %v1008_v33  ;;  %v1200_v27 = vrot.slane %v4365_v36, 3  ;;  %v1214_v22 = vrot.slane %v4365_v36, 2  ;;  %v1228_v47 = vrot.slane %v4365_v36, 1 }
 0x460   :  { %v1306_v54 = vsel %vm1242_vm10, %v4365_v36, %v1144_v29  ;;  %v1146_v57 = vrot.slane %v4371_v31, 7  ;;  %v1160_v4 = vrot.slane %v4371_v31, 6  ;;  %v1174_v63 = vrot.slane %v4371_v31, 5 }
 0x461   :  { %v4397_v30 = vrot.slane %v1014_v55, 1  ;;  %v4399_v56 = vrot.slane %v1014_v55, 2  ;;  %v4401_v38 = vrot.slane %v1014_v55, 3  ;;  %v4403_v35 = vrot.slane %v1014_v55, 4 }
 0x462   :  { %v4405_v50 = vrot.slane %v1014_v55, 5  ;;  %v4407_v60 = vrot.slane %v1014_v55, 6  ;;  %v4409_v43 = vrot.slane %v1014_v55, 7  ;;  %v1314_v28 = vsel %vm1251_vm11, %v1306_v54, %v1158_v34 }
 0x463   :  { %v1046_v61 = vrot.slane %v4397_v30, 7  ;;  %v1060_v62 = vrot.slane %v4397_v30, 6  ;;  %v1074_v0 = vrot.slane %v4397_v30, 5  ;;  %v1088_v2 = vrot.slane %v4397_v30, 4 }
 0x464   :  { %v1102_v3 = vrot.slane %v4397_v30, 3  ;;  %v1116_v7 = vrot.slane %v4397_v30, 2  ;;  %v1130_v8 = vrot.slane %v4397_v30, 1  ;;  %v1322_v1 = vsel %vm1260_vm12, %v1314_v28, %v1172_v37 }
 0x465   :  { %v1244_v6 = vsel %vm1242_vm10, %v4397_v30, %v1046_v61  ;;  %v1330_v9 = vsel %vm1269_vm13, %v1322_v1, %v1186_v39  ;;  %v1048_v12 = vrot.slane %v4401_v38, 7  ;;  %v1062_v44 = vrot.slane %v4401_v38, 6 }
 0x466   :  { %v1253_v51 = vsel %vm1251_vm11, %v1244_v6, %v1060_v62  ;;  %v1338_v15 = vsel %vm1278_vm14, %v1330_v9, %v1200_v27  ;;  %v1076_v14 = vrot.slane %v4401_v38, 5  ;;  %v1090_v16 = vrot.slane %v4401_v38, 4 }
 0x467   :  { %v1262_v18 = vsel %vm1260_vm12, %v1253_v51, %v1074_v0  ;;  %v1346_v40 = vsel %vm1287_vm15, %v1338_v15, %v1214_v22  ;;  %v1104_v49 = vrot.slane %v4401_v38, 3  ;;  %v1118_v19 = vrot.slane %v4401_v38, 2  ;;  %v1372_v0 = vld [vmem:[#allocation10 + $0x58] sm:$0xff] }
 0x468   :  { %v1271_v48 = vsel %vm1269_vm13, %v1262_v18, %v1088_v2  ;;  %v1354_v52 = vsel %vm1296_vm0, %v1346_v40, %v1228_v47  ;;  %v1132_v41 = vrot.slane %v4401_v38, 1  ;;  %v1188_v59 = vrot.slane %v4371_v31, 4 }
 0x469   :  { %v1280_v23 = vsel %vm1278_vm14, %v1271_v48, %v1102_v3  ;;  %v1386_v24 = vmul.f32 %v1370_v13, %v1354_v52  ;;  %v1202_v25 = vrot.slane %v4371_v31, 3  ;;  %v1216_v21 = vrot.slane %v4371_v31, 2 }
 0x46a   :  { %v1289_v46 = vsel %vm1287_vm15, %v1280_v23, %v1116_v7  ;;  %v1230_v26 = vrot.slane %v4371_v31, 1  ;;  %v1246_v20 = vsel %vm1242_vm10, %v4401_v38, %v1048_v12  ;;  %v1308_v45 = vsel %vm1242_vm10, %v4371_v31, %v1146_v57 }
 0x46b   :  { %v1298_v33 = vsel %vm1296_vm0, %v1289_v46, %v1130_v8  ;;  %v1255_v29 = vsel %vm1251_vm11, %v1246_v20, %v1062_v44  ;;  %v1316_v34 = vsel %vm1251_vm11, %v1308_v45, %v1160_v4  ;;  %v1243_v37 = vsel %vm1242_vm10, %v1014_v55, %v4409_v43  ;;  %v1361_v44 = vld [vmem:[#allocation10] sm:$0xff]  ;;  %v3279_v45 = vld [vmem:[#allocation13 + $0x148] sm:$0xff]  }
 0x46c   :  { %v1378_v39 = vmul.f32 %v1362_v5, %v1298_v33  ;;  %v1264_v27 = vsel %vm1260_vm12, %v1255_v29, %v1076_v14  ;;  %v1324_v22 = vsel %vm1260_vm12, %v1316_v34, %v1174_v63  ;;  %v1252_v47 = vsel %vm1251_vm11, %v1243_v37, %v4407_v60  ;;  %v1364_v63 = vld [vmem:[#allocation10 + $0x18] sm:$0xff] }
 0x46d   :  { %v1273_v54 = vsel %vm1269_vm13, %v1264_v27, %v1090_v16  ;;  %v1332_v57 = vsel %vm1269_vm13, %v1324_v22, %v1188_v59  ;;  %v1261_v28 = vsel %vm1260_vm12, %v1252_v47, %v4405_v50  ;;  %v1305_v4 = vsel %vm1242_vm10, %v4362_v42, %v4383_v10  ;;  %v1369_v16 = vld [vmem:[#allocation10 + $0x40] sm:$0xff] }
 0x46e   :  { %v1394_v55 = vpack.c.bf16 %v1386_v24, %v1378_v39  ;;  %v1282_v61 = vsel %vm1278_vm14, %v1273_v54, %v1104_v49  ;;  %v1340_v62 = vsel %vm1278_vm14, %v1332_v57, %v1202_v25  ;;  %v1270_v2 = vsel %vm1269_vm13, %v1261_v28, %v4403_v35 }
 0x46f   :  { %v1291_v3 = vsel %vm1287_vm15, %v1282_v61, %v1118_v19  ;;  %v1348_v7 = vsel %vm1287_vm15, %v1340_v62, %v1216_v21  ;;  %v1279_v8 = vsel %vm1278_vm14, %v1270_v2, %v4401_v38  ;;  %v1313_v42 = vsel %vm1251_vm11, %v1305_v4, %v4380_v11  ;;  %v3277_v21 = vld [vmem:[#allocation13 + $0x100] sm:$0xff]   ;;  %v3281_v4 = vld [vmem:[#allocation13 + $0x108] sm:$0xff]   ;;  %v1363_v62 = vld [vmem:[#allocation10 + $0x10] sm:$0xff] }
 0x470   :  { %1945 = vmatprep.mubr.bf16.mxu1 %v1394_v55  ;;  %v1300_v1 = vsel %vm1296_vm0, %v1291_v3, %v1132_v41  ;;  %v1356_v6 = vsel %vm1296_vm0, %v1348_v7, %v1230_v26  ;;  %v1288_v9 = vsel %vm1287_vm15, %v1279_v8, %v4399_v56  ;;  %v1321_v12 = vsel %vm1260_vm12, %v1313_v42, %v4377_v32  ;;  %v3283_v2 = vld [vmem:[#allocation13 + $0x150] sm:$0xff]  }
 0x471   :  { %v1380_v51 = vmul.f32 %v1364_v63, %v1300_v1  ;;  %v1388_v15 = vmul.f32 %v1372_v0, %v1356_v6  ;;  %v1297_v38 = vsel %vm1296_vm0, %v1288_v9, %v4397_v30  ;;  %v1329_v13 = vsel %vm1269_vm13, %v1321_v12, %v4374_v58 }
 0x472   :  { %v1337_v14 = vsel %vm1278_vm14, %v1329_v13, %v4371_v31  ;;  %v1377_v49 = vmul.f32 %v1361_v44, %v1297_v38  ;;  %v1047_v19 = vrot.slane %v4399_v56, 7  ;;  %v1061_v52 = vrot.slane %v4399_v56, 6  ;;  %v3285_v13 = vld [vmem:[#allocation13 + $0x110] sm:$0xff]  }
 0x473   :  { %v1396_v18 = vpack.c.bf16 %v1388_v15, %v1380_v51  ;;  %v1345_v40 = vsel %vm1287_vm15, %v1337_v14, %v4368_v53  ;;  %v1075_v41 = vrot.slane %v4399_v56, 5  ;;  %v1145_v59 = vrot.slane %v4368_v53, 7  ;;  %v3278_v14 = vld [vmem:[#allocation13 + $0x180] sm:$0xff]  }
 0x474   :  { %v1353_v48 = vsel %vm1296_vm0, %v1345_v40, %v4365_v36  ;;  %v1159_v31 = vrot.slane %v4368_v53, 6  ;;  %v1089_v23 = vrot.slane %v4399_v56, 4  ;;  %v1103_v5 = vrot.slane %v4399_v56, 3 }
 0x475   :  { %1986 = vmatprep.mubr.bf16.mxu0 %v1396_v18  ;;  %v1385_v30 = vmul.f32 %v1369_v16, %v1353_v48  ;;  %v1117_v24 = vrot.slane %v4399_v56, 2  ;;  %v1131_v25 = vrot.slane %v4399_v56, 1  ;;  %v1173_v46 = vrot.slane %v4368_v53, 5 }
 0x476   :  { %v1245_v26 = vsel %vm1242_vm10, %v4399_v56, %v1047_v19  ;;  %v1307_v20 = vsel %vm1242_vm10, %v4368_v53, %v1145_v59  ;;  %v1187_v33 = vrot.slane %v4368_v53, 4  ;;  %v1201_v29 = vrot.slane %v4368_v53, 3  ;;  %v3287_v19 = vld [vmem:[#allocation13 + $0x158] sm:$0xff]  }
 0x477   :  { %v1393_v36 = vpack.c.bf16 %v1385_v30, %v1377_v49  ;;  %v1254_v34 = vsel %vm1251_vm11, %v1245_v26, %v1061_v52  ;;  %v1315_v37 = vsel %vm1251_vm11, %v1307_v20, %v1159_v31  ;;  %v1215_v39 = vrot.slane %v4368_v53, 2  ;;  %v3289_v26 = vld [vmem:[#allocation13 + $0x118] sm:$0xff]  }
 0x478   :  { %v1229_v27 = vrot.slane %v4368_v53, 1  ;;  %v1263_v22 = vsel %vm1260_vm12, %v1254_v34, %v1075_v41  ;;  %v1323_v56 = vsel %vm1260_vm12, %v1315_v37, %v1173_v46  ;;  %v1050_v57 = vrot.slane %v4405_v50, 7  ;;  %v1371_v53 = vld [vmem:[#allocation10 + $0x50] sm:$0xff]  ;;  %v3280_v41 = vld [vmem:[#allocation13 + $0x1c8] sm:$0xff]   ;;  %v3291_v37 = vld [vmem:[#allocation13 + $0x160] sm:$0xff]  }
 0x479   :  { %1946 = vmatmul.mubr.bf16.vlgmr.msra.gmra.mrb[4].mxu1 %v1393_v36  ;;  %v1272_v47 = vsel %vm1269_vm13, %v1263_v22, %v1089_v23  ;;  %v1331_v54 = vsel %vm1269_vm13, %v1323_v56, %v1187_v33  ;;  %v1064_v28 = vrot.slane %v4405_v50, 6  ;;  %v1078_v63 = vrot.slane %v4405_v50, 5  ;;  %v3282_v34 = vld [vmem:[#allocation13 + $0x188] sm:$0xff]  }
 0x47a   :  { %2860 = vmatpush3.bf16.msra.mxu1 %v3277_v21  ;;  %v1281_v55 = vsel %vm1278_vm14, %v1272_v47, %v1103_v5  ;;  %v1339_v61 = vsel %vm1278_vm14, %v1331_v54, %v1201_v29  ;;  %v1148_v0 = vrot.slane %v4377_v32, 7  ;;  %v1092_v8 = vrot.slane %v4405_v50, 4  ;;  %v1366_v21 = vld [vmem:[#allocation10 + $0x28] sm:$0xff]  ;;  %v3284_v47 = vld [vmem:[#allocation13 + $0x1d0] sm:$0xff]  }
 0x47b   :  { %2861 = vmatprep.subr.bf16.mxu1 %v3279_v45  ;;  %v1290_v3 = vsel %vm1287_vm15, %v1281_v55, %v1117_v24  ;;  %v1347_v7 = vsel %vm1287_vm15, %v1339_v61, %v1215_v39  ;;  %v1162_v42 = vrot.slane %v4377_v32, 6  ;;  %v1106_v9 = vrot.slane %v4405_v50, 3  ;;  %v1374_v45 = vld [vmem:[#allocation10 + $0x68] sm:$0xff] }
 0x47c   :  { %v1299_v1 = vsel %vm1296_vm0, %v1290_v3, %v1131_v25  ;;  %v1355_v6 = vsel %vm1296_vm0, %v1347_v7, %v1229_v27  ;;  %v1120_v12 = vrot.slane %v4405_v50, 2  ;;  %v1134_v15 = vrot.slane %v4405_v50, 1 }
 0x47d   :  { %v1379_v44 = vmul.f32 %v1363_v62, %v1299_v1  ;;  %v1387_v51 = vmul.f32 %v1371_v53, %v1355_v6  ;;  %v1248_v38 = vsel %vm1242_vm10, %v4405_v50, %v1050_v57  ;;  %v1176_v16 = vrot.slane %v4377_v32, 5 }
 0x47e   :  { %2862 = vmatpush3.bf16.msra.mxu1 %v3281_v4  ;;  %v1190_v18 = vrot.slane %v4377_v32, 4  ;;  %v1257_v40 = vsel %vm1251_vm11, %v1248_v38, %v1064_v28  ;;  %v1310_v49 = vsel %vm1242_vm10, %v4377_v32, %v1148_v0  ;;  %v1204_v52 = vrot.slane %v4377_v32, 3 }
 0x47f   :  { %2863 = vmatprep.subr.bf16.mxu1 %v3283_v2  ;;  %v1395_v48 = vpack.c.bf16 %v1387_v51, %v1379_v44  ;;  %v1266_v30 = vsel %vm1260_vm12, %v1257_v40, %v1078_v63  ;;  %v1318_v50 = vsel %vm1251_vm11, %v1310_v49, %v1162_v42  ;;  %v1218_v59 = vrot.slane %v4377_v32, 2  ;;  %v3293_v63 = vld [vmem:[#allocation13 + $0x120] sm:$0xff]   ;;  %v3295_v42 = vld [vmem:[#allocation13 + $0x168] sm:$0xff]   ;;  %v3288_v44 = vld [vmem:[#allocation13 + $0x1d8] sm:$0xff]  }
 0x480   :  { %v1232_v31 = vrot.slane %v4377_v32, 1  ;;  %v1275_v23 = vsel %vm1269_vm13, %v1266_v30, %v1092_v8  ;;  %v1326_v5 = vsel %vm1260_vm12, %v1318_v50, %v1176_v16  ;;  %v1052_v36 = vrot.slane %v4409_v43, 7  ;;  %v3286_v8 = vld [vmem:[#allocation13 + $0x190] sm:$0xff]   ;;  %v1368_v16 = vld [vmem:[#allocation10 + $0x38] sm:$0xff]  ;;  %v3297_v40 = vld [vmem:[#allocation13 + $0x128] sm:$0xff]  }
 0x481   :  { %1987 = vmatmul.mubr.bf16.vlgmr.msra.gmra.mrb[8].mxu0 %v1395_v48  ;;  %v1284_v24 = vsel %vm1278_vm14, %v1275_v23, %v1106_v9  ;;  %v1334_v25 = vsel %vm1269_vm13, %v1326_v5, %v1190_v18  ;;  %v1066_v46 = vrot.slane %v4409_v43, 6  ;;  %v1150_v33 = vrot.slane %v4383_v10, 7  ;;  %v1376_v18 = vld [vmem:[#allocation10 + $0x78] sm:$0xff]  ;;  %v3299_v30 = vld [vmem:[#allocation13 + $0x170] sm:$0xff]   ;;  %v3292_v23 = vld [vmem:[#allocation13 + $0x1e0] sm:$0xff]  }
 0x482   :  { %2864 = vmatpush3.bf16.msra.mxu1 %v3285_v13  ;;  %2882 = vmatpush3.bf16.msra.mxu0 %v3278_v14  ;;  %v1293_v20 = vsel %vm1287_vm15, %v1284_v24, %v1120_v12  ;;  %v1342_v32 = vsel %vm1278_vm14, %v1334_v25, %v1204_v52  ;;  %v1164_v29 = vrot.slane %v4383_v10, 6  ;;  %v1080_v22 = vrot.slane %v4409_v43, 5  ;;  %v3290_v52 = vld [vmem:[#allocation13 + $0x198] sm:$0xff]  }
 0x483   :  { %2865 = vmatprep.subr.bf16.mxu1 %v3287_v19  ;;  %v1302_v39 = vsel %vm1296_vm0, %v1293_v20, %v1134_v15  ;;  %v1350_v27 = vsel %vm1287_vm15, %v1342_v32, %v1218_v59  ;;  %v1094_v56 = vrot.slane %v4409_v43, 4  ;;  %2883 = vmatprep.subr.bf16.mxu0 %v3280_v41  ;;  %v1108_v28 = vrot.slane %v4409_v43, 3 }
 0x484   :  { %v1358_v54 = vsel %vm1296_vm0, %v1350_v27, %v1232_v31  ;;  %v1382_v57 = vmul.f32 %v1366_v21, %v1302_v39  ;;  %v1122_v4 = vrot.slane %v4409_v43, 2  ;;  %v1178_v61 = vrot.slane %v4383_v10, 5 }
 0x485   :  { %v1390_v55 = vmul.f32 %v1374_v45, %v1358_v54  ;;  %v1250_v62 = vsel %vm1242_vm10, %v4409_v43, %v1052_v36  ;;  %v1312_v53 = vsel %vm1242_vm10, %v4383_v10, %v1150_v33  ;;  %v1136_v0 = vrot.slane %v4409_v43, 1 }
 0x486   :  { %2866 = vmatpush3.bf16.msra.mxu1 %v3289_v26  ;;  %v1192_v2 = vrot.slane %v4383_v10, 4  ;;  %v1259_v3 = vsel %vm1251_vm11, %v1250_v62, %v1066_v46  ;;  %v1320_v7 = vsel %vm1251_vm11, %v1312_v53, %v1164_v29  ;;  %2884 = vmatpush3.bf16.msra.mxu0 %v3282_v34  ;;  %v1206_v6 = vrot.slane %v4383_v10, 3  ;;  %v3301_v46 = vld [vmem:[#allocation13 + $0x130] sm:$0xff]   ;;  %v3294_v29 = vld [vmem:[#allocation13 + $0x1a0] sm:$0xff]   ;;  %v3303_v34 = vld [vmem:[#allocation13 + $0x178] sm:$0xff]  }
 0x487   :  { %2867 = vmatprep.subr.bf16.mxu1 %v3291_v37  ;;  %v1398_v1 = vpack.c.bf16 %v1390_v55, %v1382_v57  ;;  %v1268_v9 = vsel %vm1260_vm12, %v1259_v3, %v1080_v22  ;;  %v1328_v12 = vsel %vm1260_vm12, %v1320_v7, %v1178_v61  ;;  %2885 = vmatprep.subr.bf16.mxu0 %v3284_v47  ;;  %v1220_v43 = vrot.slane %v4383_v10, 2  ;;  %v3296_v22 = vld [vmem:[#allocation13 + $0x1e8] sm:$0xff]   ;;  %v3305_v62 = vld [vmem:[#allocation13 + $0x138] sm:$0xff]  }
 0x488   :  { %v1234_v51 = vrot.slane %v4383_v10, 1  ;;  %v1277_v15 = vsel %vm1269_vm13, %v1268_v9, %v1094_v56  ;;  %v1336_v38 = vsel %vm1269_vm13, %v1328_v12, %v1192_v2  ;;  %v1049_v49 = vrot.slane %v4403_v35, 7  ;;  %v3298_v7 = vld [vmem:[#allocation13 + $0x1a8] sm:$0xff]  }
 0x489   :  { %2027 = vmatprep.mubr.bf16.mxu1 %v1398_v1  ;;  %v1286_v13 = vsel %vm1278_vm14, %v1277_v15, %v1108_v28  ;;  %v1344_v14 = vsel %vm1278_vm14, %v1336_v38, %v1206_v6  ;;  %v1063_v19 = vrot.slane %v4403_v35, 6  ;;  %v1147_v50 = vrot.slane %v4374_v58, 7  ;;  %v3300_v6 = vld [vmem:[#allocation13 + $0x1f0] sm:$0xff]  }
 0x48a   :  { %2868 = vmatpush3.bf16.msra.mxu1 %v3293_v63  ;;  %v1295_v48 = vsel %vm1287_vm15, %v1286_v13, %v1122_v4  ;;  %v1352_v10 = vsel %vm1287_vm15, %v1344_v14, %v1220_v43  ;;  %2886 = vmatpush3.bf16.msra.mxu0 %v3286_v8  ;;  %v1161_v41 = vrot.slane %v4374_v58, 6  ;;  %v1077_v5 = vrot.slane %v4403_v35, 5  ;;  %v1365_v63 = vld [vmem:[#allocation10 + $0x20] sm:$0xff] }
 0x48b   :  { %2869 = vmatprep.subr.bf16.mxu1 %v3295_v42  ;;  %v1304_v59 = vsel %vm1296_vm0, %v1295_v48, %v1136_v0  ;;  %v1360_v31 = vsel %vm1296_vm0, %v1352_v10, %v1234_v51  ;;  %2887 = vmatprep.subr.bf16.mxu0 %v3288_v44  ;;  %v1091_v21 = vrot.slane %v4403_v35, 4  ;;  %v1105_v36 = vrot.slane %v4403_v35, 3  ;;  %v1373_v0 = vld [vmem:[#allocation10 + $0x60] sm:$0xff]  ;;  %v3304_v48 = vld [vmem:[#allocation13 + $0x1f8] sm:$0xff]  }
 0x48c   :  { %v1384_v24 = vmul.f32 %v1368_v16, %v1304_v59  ;;  %v1392_v25 = vmul.f32 %v1376_v18, %v1360_v31  ;;  %v1119_v26 = vrot.slane %v4403_v35, 2  ;;  %v1175_v20 = vrot.slane %v4374_v58, 5  ;;  %v3302_v16 = vld [vmem:[#allocation13 + $0x1b0] sm:$0xff]  }
 0x48d   :  { %v1247_v32 = vsel %vm1242_vm10, %v4403_v35, %v1049_v49  ;;  %v1309_v45 = vsel %vm1242_vm10, %v4374_v58, %v1147_v50  ;;  %v1189_v37 = vrot.slane %v4374_v58, 4  ;;  %v1133_v56 = vrot.slane %v4403_v35, 1 }
 0x48e   :  { %2870 = vmatpush3.bf16.msra.mxu1 %v3297_v40  ;;  %v1400_v33 = vpack.c.bf16 %v1392_v25, %v1384_v24  ;;  %2888 = vmatpush3.bf16.msra.mxu0 %v3290_v52  ;;  %v1256_v39 = vsel %vm1251_vm11, %v1247_v32, %v1063_v19  ;;  %v1317_v27 = vsel %vm1251_vm11, %v1309_v45, %v1161_v41  ;;  %v1203_v47 = vrot.slane %v4374_v58, 3 }
 0x48f   :  { %2871 = vmatprep.subr.bf16.mxu1 %v3299_v30  ;;  %2889 = vmatprep.subr.bf16.mxu0 %v3292_v23  ;;  %v1265_v54 = vsel %vm1260_vm12, %v1256_v39, %v1077_v5  ;;  %v1325_v57 = vsel %vm1260_vm12, %v1317_v27, %v1175_v20  ;;  %v1217_v28 = vrot.slane %v4374_v58, 2  ;;  %v1231_v4 = vrot.slane %v4374_v58, 1  ;;  %v3310_v39 = vld [vmem:[#allocation14 + $0x8] ss:$16 sps:$4 sm:$0xff]   ;;  %v3312_v27 = vld [vmem:[#allocation14 + $0xc] ss:$16 sps:$4 sm:$0xff]  }
 0x490   :  { %2068 = vmatprep.mubr.bf16.mxu0 %v1400_v33  ;;  %v1274_v55 = vsel %vm1269_vm13, %v1265_v54, %v1091_v21  ;;  %v1333_v61 = vsel %vm1269_vm13, %v1325_v57, %v1189_v37  ;;  %v1051_v2 = vrot.slane %v4407_v60, 7  ;;  %v1149_v3 = vrot.slane %v4380_v11, 7  ;;  %v3309_v37 = vld [vmem:[#allocation14 + $0x4] ss:$16 sps:$4 sm:$0xff]   ;;  %v3316_v54 = vld [vmem:[#allocation14 + $0x28] ss:$16 sps:$4 sm:$0xff]  }
 0x491   :  { %v1283_v53 = vsel %vm1278_vm14, %v1274_v55, %v1105_v36  ;;  %v1341_v35 = vsel %vm1278_vm14, %v1333_v61, %v1203_v47  ;;  %v1065_v42 = vrot.slane %v4407_v60, 6  ;;  %v1163_v1 = vrot.slane %v4380_v11, 6  ;;  %v1367_v36 = vld [vmem:[#allocation10 + $0x30] sm:$0xff] }
 0x492   :  { %2872 = vmatpush3.bf16.msra.mxu1 %v3301_v46  ;;  %2890 = vmatpush3.bf16.msra.mxu0 %v3294_v29  ;;  %v1292_v58 = vsel %vm1287_vm15, %v1283_v53, %v1119_v26  ;;  %v1349_v8 = vsel %vm1287_vm15, %v1341_v35, %v1217_v28  ;;  %v1079_v51 = vrot.slane %v4407_v60, 5  ;;  %v1093_v15 = vrot.slane %v4407_v60, 4  ;;  %v1375_v46 = vld [vmem:[#allocation10 + $0x70] sm:$0xff]  ;;  %v3306_v26 = vld [vmem:[#allocation13 + $0x1b8] sm:$0xff]  }
 0x493   :  { %2873 = vmatprep.subr.bf16.mxu1 %v3303_v34  ;;  %2891 = vmatprep.subr.bf16.mxu0 %v3296_v22  ;;  %v1301_v9 = vsel %vm1296_vm0, %v1292_v58, %v1133_v56  ;;  %v1357_v12 = vsel %vm1296_vm0, %v1349_v8, %v1231_v4  ;;  %v1177_v38 = vrot.slane %v4380_v11, 5  ;;  %v1249_v13 = vsel %vm1242_vm10, %v4407_v60, %v1051_v2  ;;  %v3307_v34 = vld [vmem:[#allocation14] ss:$16 sps:$4 sm:$0xff]   ;;  %v3315_v22 = vld [vmem:[#allocation14 + $0x24] ss:$16 sps:$4 sm:$0xff]  }
 0x494   :  { %v1381_v44 = vmul.f32 %v1365_v63, %v1301_v9  ;;  %v1389_v43 = vmul.f32 %v1373_v0, %v1357_v12  ;;  %v1311_v14 = vsel %vm1242_vm10, %v4380_v11, %v1149_v3  ;;  %v1191_v40 = vrot.slane %v4380_v11, 4  ;;  %v3318_v56 = vld [vmem:[#allocation14 + $0x2c] ss:$16 sps:$4 sm:$0xff]   ;;  %v3313_v47 = vld [vmem:[#allocation14 + $0x20] ss:$16 sps:$4 sm:$0xff]  }
 0x495   :  { %v1258_v49 = vsel %vm1251_vm11, %v1249_v13, %v1065_v42  ;;  %v1319_v19 = vsel %vm1251_vm11, %v1311_v14, %v1163_v1  ;;  %v1107_v10 = vrot.slane %v4407_v60, 3  ;;  %v1205_v52 = vrot.slane %v4380_v11, 3  ;;  %v3321_v57 = vld [vmem:[#allocation14 + $0x44] ss:$16 sps:$4 sm:$0xff]   ;;  %v3324_v28 = vld [vmem:[#allocation14 + $0x4c] ss:$16 sps:$4 sm:$0xff]  }
 0x496   :  { %2874 = vmatpush3.bf16.msra.mxu1 %v3305_v62  ;;  %2892 = vmatpush3.bf16.msra.mxu0 %v3298_v7  ;;  %v1397_v18 = vpack.c.bf16 %v1389_v43, %v1381_v44  ;;  %v1267_v30 = vsel %vm1260_vm12, %v1258_v49, %v1079_v51  ;;  %v1327_v50 = vsel %vm1260_vm12, %v1319_v19, %v1177_v38  ;;  %v1121_v41 = vrot.slane %v4407_v60, 2  ;;  %v3319_v4 = vld [vmem:[#allocation14 + $0x40] ss:$16 sps:$4 sm:$0xff]  }
 0x497   :  { %2893 = vmatprep.subr.bf16.mxu0 %v3300_v6  ;;  %v1219_v59 = vrot.slane %v4380_v11, 2  ;;  %v1276_v31 = vsel %vm1269_vm13, %v1267_v30, %v1093_v15  ;;  %v1335_v23 = vsel %vm1269_vm13, %v1327_v50, %v1191_v40  ;;  %v1135_v5 = vrot.slane %v4407_v60, 1  ;;  %2295 = vmatprep.subr.bf16.mxu1 %v3309_v37  ;;  %v3416_v30 = vld [vmem:[#allocation2 + $0x8] sm:$0xff] }
 0x498   :  { %v1233_v24 = vrot.slane %v4380_v11, 1  ;;  %v1285_v25 = vsel %vm1278_vm14, %v1276_v31, %v1107_v10  ;;  %v1343_v21 = vsel %vm1278_vm14, %v1335_v23, %v1205_v52  ;;  %v3325_v31 = vld [vmem:[#allocation14 + $0x60] ss:$16 sps:$4 sm:$0xff]   ;;  %v3327_v23 = vld [vmem:[#allocation14 + $0x64] ss:$16 sps:$4 sm:$0xff]  }
 0x499   :  { %2028 = vmatmul.mubr.bf16.vlgmr.msra.gmra.mrb[8].mxu1 %v1397_v18  ;;  %v1294_v20 = vsel %vm1287_vm15, %v1285_v25, %v1121_v41  ;;  %v1351_v32 = vsel %vm1287_vm15, %v1343_v21, %v1219_v59  ;;  %v3333_v25 = vld [vmem:[#allocation14 + $0x84] ss:$16 sps:$4 sm:$0xff]   ;;  %v3336_v21 = vld [vmem:[#allocation14 + $0x8c] ss:$16 sps:$4 sm:$0xff]  }
 0x49a   :  { %2327 = vmatprep.mubr.bf16.mxu1 %v3665_v17  ;;  %2894 = vmatpush3.bf16.msra.mxu0 %v3302_v16  ;;  %v1303_v45 = vsel %vm1296_vm0, %v1294_v20, %v1135_v5  ;;  %v1359_v60 = vsel %vm1296_vm0, %v1351_v32, %v1233_v24  ;;  %v3328_v5 = vld [vmem:[#allocation14 + $0x68] ss:$16 sps:$4 sm:$0xff]   ;;  %v3330_v24 = vld [vmem:[#allocation14 + $0x6c] ss:$16 sps:$4 sm:$0xff]   ;;  %v3337_v32 = vld [vmem:[#allocation14 + $0xa0] ss:$16 sps:$4 sm:$0xff]  }
 0x49b   :  { %2895 = vmatprep.subr.bf16.mxu0 %v3304_v48  ;;  %v1383_v11 = vmul.f32 %v1367_v36, %v1303_v45  ;;  %v1391_v33 = vmul.f32 %v1375_v46, %v1359_v60  ;;  %2296 = vmatpush1.bf16.msra.mxu1 %v3307_v34  ;;  %v3415_v48 = vld [vmem:[#allocation2] sm:$0xff]  ;;  %v3334_v46 = vld [vmem:[#allocation14 + $0x88] ss:$16 sps:$4 sm:$0xff]   ;;  %v3342_v20 = vld [vmem:[#allocation14 + $0xac] ss:$16 sps:$4 sm:$0xff]  }
 0x49c   :  { %2297 = vmatprep.subr.bf16.mxu1 %v3315_v22  ;;  %v3331_v36 = vld [vmem:[#allocation14 + $0x80] ss:$16 sps:$4 sm:$0xff]   ;;  %v3340_v45 = vld [vmem:[#allocation14 + $0xa8] ss:$16 sps:$4 sm:$0xff]   ;;  %v3345_v60 = vld [vmem:[#allocation14 + $0xc4] ss:$16 sps:$4 sm:$0xff]  }
 0x49d   :  { %v1399_v29 = vpack.c.bf16 %v1391_v33, %v1383_v11  ;;  %v3348_v11 = vld [vmem:[#allocation14 + $0xcc] ss:$16 sps:$4 sm:$0xff]   ;;  %v3343_v33 = vld [vmem:[#allocation14 + $0xc0] ss:$16 sps:$4 sm:$0xff]   ;;  %v3351_v34 = vld [vmem:[#allocation14 + $0xe4] ss:$16 sps:$4 sm:$0xff]  }
 0x49e   :  { %2896 = vmatpush3.bf16.msra.mxu0 %v3306_v26  ;;  %v3339_v26 = vld [vmem:[#allocation14 + $0xa4] ss:$16 sps:$4 sm:$0xff]   ;;  %v3354_v37 = vld [vmem:[#allocation14 + $0xec] ss:$16 sps:$4 sm:$0xff]  }
 0x49f   :  { %2338 = vmatprep.subr.bf16.mxu0 %v3312_v27  ;;  %2298 = vmatpush1.bf16.msra.mxu1 %v3313_v47  ;;  %v3352_v27 = vld [vmem:[#allocation14 + $0xe8] ss:$16 sps:$4 sm:$0xff]  }
 0x4a0   :  { %2299 = vmatprep.subr.bf16.mxu1 %v3321_v57 }
 0x4a1   :  { %2069 = vmatmul.mubr.bf16.vlgmr.msra.gmra.mrb[12].mxu0 %v1399_v29  ;;  %v3346_v29 = vld [vmem:[#allocation14 + $0xc8] ss:$16 sps:$4 sm:$0xff]  }
 0x4a2   :  { %2370 = vmatprep.mubr.bf16.mxu0 %v3665_v17  ;;  %2339 = vmatpush1.bf16.msra.mxu0 %v3310_v39  ;;  %v3322_v17 = vld [vmem:[#allocation14 + $0x48] ss:$16 sps:$4 sm:$0xff]   ;;  %v3349_v39 = vld [vmem:[#allocation14 + $0xe0] ss:$16 sps:$4 sm:$0xff]  }
 0x4a3   :  { %2340 = vmatprep.subr.bf16.mxu0 %v3318_v56  ;;  %2300 = vmatpush1.bf16.msra.mxu1 %v3319_v4 }
 0x4a4   :  { %2301 = vmatprep.subr.bf16.mxu1 %v3327_v23 }
 0x4a6   :  { %2341 = vmatpush1.bf16.msra.mxu0 %v3316_v54 }
 0x4a7   :  { %2342 = vmatprep.subr.bf16.mxu0 %v3324_v28  ;;  %2302 = vmatpush1.bf16.msra.mxu1 %v3325_v31 }
 0x4a8   :  { %2303 = vmatprep.subr.bf16.mxu1 %v3333_v25 }
 0x4aa   :  { %2343 = vmatpush1.bf16.msra.mxu0 %v3322_v17 }
 0x4ab   :  { %2344 = vmatprep.subr.bf16.mxu0 %v3330_v24  ;;  %2304 = vmatpush1.bf16.msra.mxu1 %v3331_v36 }
 0x4ac   :  { %2305 = vmatprep.subr.bf16.mxu1 %v3339_v26 }
 0x4ae   :  { %2345 = vmatpush1.bf16.msra.mxu0 %v3328_v5 }
 0x4af   :  { %2346 = vmatprep.subr.bf16.mxu0 %v3336_v21  ;;  %2306 = vmatpush1.bf16.msra.mxu1 %v3337_v32 }
 0x4b0   :  { %2307 = vmatprep.subr.bf16.mxu1 %v3345_v60 }
 0x4b2   :  { %2347 = vmatpush1.bf16.msra.mxu0 %v3334_v46 }
 0x4b3   :  { %2348 = vmatprep.subr.bf16.mxu0 %v3342_v20  ;;  %2308 = vmatpush1.bf16.msra.mxu1 %v3343_v33 }
 0x4b4   :  { %2309 = vmatprep.subr.bf16.mxu1 %v3351_v34 }
 0x4b6   :  { %2349 = vmatpush1.bf16.msra.mxu0 %v3340_v45 }
 0x4b7   :  { %2350 = vmatprep.subr.bf16.mxu0 %v3348_v11  ;;  %2310 = vmatpush1.bf16.msra.mxu1 %v3349_v39 }
 0x4ba   :  { %2351 = vmatpush1.bf16.msra.mxu0 %v3346_v29 }
 0x4bb   :  { %2352 = vmatprep.subr.bf16.mxu0 %v3354_v37 }
 0x4be   :  { %2353 = vmatpush1.bf16.msra.mxu0 %v3352_v27 }
 0x54c   :  { %v2831_v55 = vpop.f32.mrb[4].mxu1 }
 0x54d   :  { %v2832_v61 = vpop.f32.mrb[5].mxu1 }
 0x54e   :  { %v2833_v62 = vadd.f32 %v2832_v61, %v2831_v55  ;;  %v2834_v53 = vpop.f32.mrb[6].mxu1  ;;  %v2690_v61 = vld [vmem:[%s4679_s9] ss:$0 sm:$0xff]  ;;  %s3674_s9 = smov [#allocation17]  }
 0x54f   :  { %v2835_v35 = vpop.f32.mrb[7].mxu1  ;;  %s2593_s26 = sshll.u32 %s3674_s9, 4  ;;  %s2594_s26 = int_to_ptr.vmem [resolvable:$true] %s2593_s26 }
 0x550   :  { %v2836_v63 = vadd.f32 %v2835_v35, %v2834_v53  ;;  %s3615_s15 = scalar_lea.vmem %s2594_s26, 256  ;;  %p3620_p3 = scmp.lt.s32.totalorder %s2594_s26, %s2594_s26 }
 0x551   :  { %p3616_p2 = scmp.ne.s32.totalorder %s2594_s26, %s3615_s15  ;;  %p3621_p4 = scmp.lt.s32.totalorder %s3615_s15, %s3615_s15 }
 0x553   :  { %p3622_p5 = por %p3621_p4, %p3620_p3 }
 0x554   :  { %v2853_v0 = vpop.f32.mrb[8].mxu0 }
 0x555   :  { %v2854_v2 = vpop.f32.mrb[9].mxu0  ;;  %p3623_p6 = pnand %p3622_p5, %p3616_p2 }
 0x556   :  { %v2855_v3 = vadd.f32 %v2854_v2, %v2853_v0  ;;  %v2856_v7 = vpop.f32.mrb[10].mxu0  ;;  %v3355_v0 = vld [vmem:[#allocation16 + $0x40] sm:$0xff]  }
 0x557   :  { %v2857_v58 = vpop.f32.mrb[11].mxu0  ;;  %v3356_v2 = vld [vmem:[#allocation16] sm:$0xff]   ;;  %2903 = vmatprep.subr.bf16.mxu1 %v3355_v0 }
 0x558   :  { %v1989_v8 = vadd.f32 %v2855_v3, %v2833_v62  ;;  %v2858_v42 = vadd.f32 %v2857_v58, %v2856_v7  ;;  %v3357_v3 = vld [vmem:[#allocation16 + $0x48] sm:$0xff]   ;;  %v3359_v58 = vld [vmem:[#allocation16 + $0x50] sm:$0xff]  }
 0x559   :  { %v3358_v7 = vld [vmem:[#allocation16 + $0x8] sm:$0xff]  }
 0x55a   :  { %v1992_v1 = vadd.f32 %v2858_v42, %v2836_v63  ;;  %v3361_v42 = vld [vmem:[#allocation16 + $0x58] sm:$0xff]  }
 0x56c   :  { %v2875_v6 = vpop.f32.mrb[8].mxu1 }
 0x56d   :  { %v2876_v9 = vpop.f32.mrb[9].mxu1 }
 0x56e   :  { %v2877_v12 = vadd.f32 %v2876_v9, %v2875_v6  ;;  %v2878_v44 = vpop.f32.mrb[10].mxu1  ;;  %v3363_v6 = vld [vmem:[#allocation16 + $0x60] sm:$0xff]  }
 0x56f   :  { %v2879_v43 = vpop.f32.mrb[11].mxu1  ;;  %v3364_v9 = vld [vmem:[#allocation16 + $0x20] sm:$0xff]  }
 0x570   :  { %v2030_v51 = vadd.f32 %v2877_v12, %v1989_v8  ;;  %v2880_v15 = vadd.f32 %v2879_v43, %v2878_v44  ;;  %v3360_v8 = vld [vmem:[#allocation16 + $0x10] sm:$0xff]   ;;  %v3365_v12 = vld [vmem:[#allocation16 + $0x68] sm:$0xff]  }
 0x571   :  { %v3366_v44 = vld [vmem:[#allocation16 + $0x28] sm:$0xff]   ;;  %v3367_v43 = vld [vmem:[#allocation16 + $0x70] sm:$0xff]  }
 0x572   :  { %v2033_v38 = vadd.f32 %v2880_v15, %v1992_v1  ;;  %v3362_v1 = vld [vmem:[#allocation16 + $0x18] sm:$0xff]  }
 0x573   :  { %v3369_v15 = vld [vmem:[#allocation16 + $0x78] sm:$0xff]  }
 0x574   :  { %v2897_v13 = vpop.f32.mrb[12].mxu0 }
 0x575   :  { %v2898_v14 = vpop.f32.mrb[13].mxu0 }
 0x576   :  { %v2899_v16 = vadd.f32 %v2898_v14, %v2897_v13  ;;  %v2900_v18 = vpop.f32.mrb[14].mxu0 }
 0x577   :  { %v2901_v40 = vpop.f32.mrb[15].mxu0 }
 0x578   :  { %v2071_v49 = vadd.f32 %v2899_v16, %v2030_v51  ;;  %v2902_v19 = vadd.f32 %v2901_v40, %v2900_v18  ;;  %v3368_v51 = vld [vmem:[#allocation16 + $0x30] sm:$0xff]  }
 0x57a   :  { %v4640_v10 = vadd.f32 %v3415_v48, %v2071_v49  ;;  %v2074_v52 = vadd.f32 %v2902_v19, %v2033_v38  ;;  %v3370_v38 = vld [vmem:[#allocation16 + $0x38] sm:$0xff]  }
 0x57c   :  { %v4642_v50 = vadd.f32 %v3416_v30, %v2074_v52  ;;  %v2080_v41 = vmul.f32 %v4640_v10, %v4640_v10 }
 0x57e   :  { %2082 = vadd.xlane.f32.xlu1 %v2080_v41  ;;  %v2081_v59 = vmul.f32 %v4642_v50, %v4642_v50 }
 0x580   :  { %2084 = vadd.xlane.f32.xlu0 %v2081_v59 }
 0x60b   :  { %v2083_v22 = vpop.xlane.xlu1 %2082 }
 0x60c   :  { %v2086_v56 = vmul.f32 0.0078125, %v2083_v22 }
 0x60d   :  { %v2085_v47 = vpop.xlane.xlu0 %2084 }
 0x60e   :  { %v2088_v54 = vadd.f32 1e-06, %v2086_v56  ;;  %v2087_v57 = vmul.f32 0.0078125, %v2085_v47 }
 0x610   :  { %3395 = vrsqrt.f32 %v2088_v54  ;;  %v2089_v28 = vadd.f32 1e-06, %v2087_v57 }
 0x612   :  { %3397 = vrsqrt.f32 %v2089_v28 }
 0x61a   :  { %v3396_v4 = vpop.eup %3395 }
 0x61b   :  { %v2092_v17 = vmul.f32 %v3396_v4, %v4640_v10 }
 0x61c   :  { %v3398_v55 = vpop.eup %3397 }
 0x61d   :  { %v2093_v62 = vmul.f32 %v3398_v55, %v4642_v50  ;;  %v2100_v53 = vmul.f32 %v2690_v61, %v2092_v17 }
 0x61f   :  { %v2101_v35 = vmul.f32 %v2690_v61, %v2093_v62 }
 0x621   :  { %v2102_v63 = vpack.c.bf16 %v2101_v35, %v2100_v53 }
 0x623   :  { %2328 = vmatmul.mubr.bf16.vlgmr.msra.gmra.mrb[12].mxu1 %v2102_v63  ;;  %2371 = vmatmul.mubr.bf16.vlgmr.msra.gmra.mrb[16].mxu0 %v2102_v63 }
 0x624   :  { %2904 = vmatpush3.bf16.msra.mxu1 %v3356_v2 }
 0x625   :  { %2905 = vmatprep.subr.bf16.mxu1 %v3357_v3 }
 0x628   :  { %2906 = vmatpush3.bf16.msra.mxu1 %v3358_v7 }
 0x629   :  { %2907 = vmatprep.subr.bf16.mxu1 %v3359_v58 }
 0x62c   :  { %2908 = vmatpush3.bf16.msra.mxu1 %v3360_v8 }
 0x62d   :  { %2909 = vmatprep.subr.bf16.mxu1 %v3361_v42 }
 0x630   :  { %2910 = vmatpush3.bf16.msra.mxu1 %v3362_v1 }
 0x631   :  { %2911 = vmatprep.subr.bf16.mxu1 %v3363_v6 }
 0x634   :  { %2912 = vmatpush3.bf16.msra.mxu1 %v3364_v9 }
 0x635   :  { %2913 = vmatprep.subr.bf16.mxu1 %v3365_v12 }
 0x638   :  { %2914 = vmatpush3.bf16.msra.mxu1 %v3366_v44 }
 0x639   :  { %2915 = vmatprep.subr.bf16.mxu1 %v3367_v43 }
 0x63c   :  { %2916 = vmatpush3.bf16.msra.mxu1 %v3368_v51 }
 0x63d   :  { %2917 = vmatprep.subr.bf16.mxu1 %v3369_v15 }
 0x640   :  { %2918 = vmatpush3.bf16.msra.mxu1 %v3370_v38 }
 0x6f6   :  { %v2329_v13 = vpop.f32.mrb[12].mxu1  ;;  %v2372_v14 = vpop.f32.mrb[16].mxu0 }
 0x6f7   :  { %v2723_v16 = vmul.f32 -1.442695, %v2329_v13  ;;  %v2331_v18 = vpop.f32.mrb[13].mxu1  ;;  %v2374_v40 = vpop.f32.mrb[17].mxu0 }
 0x6f8   :  { %v2724_v49 = vmul.f32 -1.442695, %v2331_v18  ;;  %v2333_v19 = vpop.f32.mrb[14].mxu1  ;;  %v2376_v48 = vpop.f32.mrb[18].mxu0 }
 0x6f9   :  { %3399 = vpow2.f32 %v2723_v16  ;;  %v2725_v52 = vmul.f32 -1.442695, %v2333_v19  ;;  %v2335_v30 = vpop.f32.mrb[15].mxu1  ;;  %v2378_v41 = vpop.f32.mrb[19].mxu0 }
 0x6fa   :  { %3401 = vpow2.f32 %v2724_v49  ;;  %v2726_v59 = vmul.f32 -1.442695, %v2335_v30 }
 0x6fb   :  { %3403 = vpow2.f32 %v2725_v52 }
 0x6fc   :  { %3405 = vpow2.f32 %v2726_v59 }
 0x703   :  { %v3400_v31 = vpop.eup %3399 }
 0x704   :  { %v3402_v23 = vpop.eup %3401  ;;  %v2393_v5 = vadd.f32 1.0, %v3400_v31 }
 0x705   :  { %v3404_v24 = vpop.eup %3403  ;;  %v2394_v25 = vadd.f32 1.0, %v3402_v23 }
 0x706   :  { %v3406_v21 = vpop.eup %3405  ;;  %3407 = vrcp.f32 %v2393_v5  ;;  %v2395_v36 = vadd.f32 1.0, %v3404_v24 }
 0x707   :  { %3409 = vrcp.f32 %v2394_v25  ;;  %v2396_v46 = vadd.f32 1.0, %v3406_v21 }
 0x708   :  { %3411 = vrcp.f32 %v2395_v36 }
 0x709   :  { %3413 = vrcp.f32 %v2396_v46 }
 0x710   :  { %v3408_v26 = vpop.eup %3407 }
 0x711   :  { %v3410_v20 = vpop.eup %3409  ;;  %v2405_v32 = vmul.f32 %v3408_v26, %v2329_v13 }
 0x712   :  { %v3412_v45 = vpop.eup %3411  ;;  %v2406_v60 = vmul.f32 %v3410_v20, %v2331_v18 }
 0x713   :  { %v3414_v11 = vpop.eup %3413  ;;  %v2409_v33 = vmul.f32 %v2405_v32, %v2372_v14  ;;  %v2407_v29 = vmul.f32 %v3412_v45, %v2333_v19 }
 0x714   :  { %v2410_v34 = vmul.f32 %v2406_v60, %v2374_v40  ;;  %v2408_v37 = vmul.f32 %v3414_v11, %v2335_v30 }
 0x715   :  { %v2411_v39 = vmul.f32 %v2407_v29, %v2376_v48 }
 0x716   :  { %v2412_v27 = vmul.f32 %v2408_v37, %v2378_v41 }
 0x717   :  { %v2413_v22 = vpack.c.bf16 %v2411_v39, %v2409_v33 }
 0x718   :  { %v2414_v56 = vpack.c.bf16 %v2412_v27, %v2410_v34 }
 0x71a   :  { %2575 = vmatprep.mubr.bf16.mxu1 %v2414_v56 }
 0x71b   :  { %2576 = vmatmul.mubr.bf16.vlgmr.msra.gmra.mrb[16].mxu1 %v2413_v22 }
 0x7ee   :  { %v2919_v47 = vpop.f32.mrb[16].mxu1 }
 0x7ef   :  { %v2920_v54 = vpop.f32.mrb[17].mxu1 }
 0x7f0   :  { %v2921_v57 = vadd.f32 %v2920_v54, %v2919_v47  ;;  %v2922_v28 = vpop.f32.mrb[18].mxu1 }
 0x7f1   :  { %v2923_v4 = vpop.f32.mrb[19].mxu1 }
 0x7f2   :  { %v2584_v17 = vadd.f32 %v2921_v57, %v4640_v10  ;;  %v2924_v55 = vadd.f32 %v2923_v4, %v2922_v28 }
 0x7f4   :  { %2586 = vst [vmem:[#allocation17] sm:$0xff] %v2584_v17  ;;  %v2585_v61 = vadd.f32 %v2924_v55, %v4642_v50 }
 0x7f6   :  { %2587 = vst [vmem:[#allocation17 + $0x8] sm:$0xff] %v2585_v61 }
 0x7f7   :  { %3626 = shalt.err (!%p3623_p6)
}
 0x7f8   :  { %s3627_s17 = scalar_lea.hbm %s4683_s13, 256 }
 0x7f9   :  { %p3628_p7 = scmp.ne.s32.totalorder %s4683_s13, %s3627_s17  ;;  %p3631_p8 = scmp.lt.u32.totalorder %s3627_s17, %s4683_s13 }
 0x7fb   :  { %p3633_p9 = pnand %p3631_p8, %p3628_p7 }
 0x7fd   :  { %3636 = shalt.err (!%p3633_p9)
}
 0x7fe   :  { %2599 = dma.vmem_to_hbm [thread:$0]  %s2594_s26, 256, %s4683_s13, [#allocation4], %s3651_s19, %s3651_s19, %s3652_s20  }
 0x7ff   :  { %3647 = dma.done.wait [#allocation4], 256  }
 0x800   :  { %3648 = vsyncadd [#allocation4], 4294967040 }
 0x801   :  { %2603 = vsyncpa [#allocation3], 1 }
 0x802   :  { %2604 = vsyncpa [#allocation6], 1 }
 0x803   :  { %2605 = vsyncpa [#allocation9], 1 }
 0x804   :  { %2606 = vsyncpa [#allocation12], 1 }
 0x805   :  { %2607 = vsyncpa [#allocation15], 1 }
 0x806   :  { %2608 = vsyncpa [#allocation4], 1 }

</bundles_post_ra>
